<compile_context>
chip_gen: v6e
topology: v6e:2x2x1
jax: 0.10.0
libtpu: 0.0.40
codegen_flags: <defaults>
</compile_context>

<pallas_src>
import functools

import jax
import jax.numpy as jnp
import numpy as np
from jax.experimental import pallas as pl
from jax.experimental.pallas import tpu as pltpu

_LANE_CHUNK = 512      # lanes per inner fori_loop step (multiple of 128)
_CHUNK_UNROLL = 4      # fori_loop unroll factor (bounds vreg live ranges)


def _cdiv(a, b):
    return -(-a // b)


def _round_up(a, b):
    return _cdiv(a, b) * b


@functools.lru_cache(maxsize=1)
def _tpu_kind():
    try:
        return jax.devices()[0].device_kind.lower()
    except Exception:  # pragma: no cover
        return ""


def _vmem_lane_bytes(rows, itemsize):
    # Sublane padding of a (rows, lanes) VMEM block: 8 rows for 4-byte dtypes,
    # 16 for 2-byte, 32 for 1-byte.
    itemsize = int(itemsize)
    unit = 8 * max(1, 4 // itemsize)
    return _round_up(rows, unit) * itemsize


def _make_stats_kernel(num_classes, vs, tile, chunk, tiles_per_split, has_edge):
    """Per-tile softmax / dice / CE statistics kernel (closure over config)."""
    num_chunks = tile // chunk
    unroll = max(1, min(_CHUNK_UNROLL, num_chunks))

    def kernel(logits_ref, labels_ref, inter_ref, psq_ref, lsum_ref, ce_ref):
        s = pl.program_id(0)      # voxel-reduction split (v7x megacore axis)
        n = pl.program_id(1)      # batch element (also megacore-splittable)
        i = pl.program_id(2)      # voxel tile within this split

        # New (split, batch) output block: zero the resident accumulators.
        @pl.when(i == 0)
        def _init():
            inter_ref[...] = jnp.zeros_like(inter_ref)
            psq_ref[...] = jnp.zeros_like(psq_ref)
            lsum_ref[...] = jnp.zeros_like(lsum_ref)
            ce_ref[...] = jnp.zeros_like(ce_ref)

        tile_start = (s * tiles_per_split + i) * tile

        # Loop-invariant iotas hoisted out of the chunk loop (JAX does not CSE
        # broadcast_in_dim).
        ch_iota = jax.lax.broadcasted_iota(jnp.int32, (num_classes, chunk), 0)
        lane_iota = jax.lax.broadcasted_iota(jnp.int32, (1, chunk), 1)

        def run_tile(masked):
            def body(j, carry):
                acc_inter, acc_psq, acc_lsum, acc_ce = carry
                lo = pl.multiple_of(j * chunk, chunk)
                x = logits_ref[:, pl.ds(lo, chunk)].astype(jnp.float32)
                lab = labels_ref[:, pl.ds(lo, chunk)].astype(jnp.int32)

                if masked:
                    valid = (tile_start + lo + lane_iota) < vs       # (1, chunk)
                    maskf = valid.astype(jnp.float32)
                    x = jnp.where(valid, x, 0.0)      # neutralize stale lanes
                    onehot = jnp.where((ch_iota == lab) & valid, 1.0, 0.0)
                else:
                    onehot = jnp.where(ch_iota == lab, 1.0, 0.0)

                # Numerically stable softmax across channels (sublane axis).
                m = jnp.max(x, axis=0, keepdims=True)                # (1, chunk)
                e = jnp.exp(x - m)                                   # (C, chunk)
                ssum = jnp.sum(e, axis=0, keepdims=True)             # (1, chunk)
                # approx=True would keep this purely on the EUP, but its ~1e-3
                # relative error accumulated over millions of p^2 terms can
                # exceed the 1e-4 tolerance; keep the exact reciprocal.
                inv = pl.reciprocal(ssum, approx=False)
                p = e * inv

                # Cross-entropy per voxel: logsumexp(x) - x[label].
                x_at_label = jnp.sum(x * onehot, axis=0, keepdims=True)
                lse = m + jnp.log(ssum)

                if masked:
                    psq_term = (p * maskf) * p
                    ce_term = maskf * lse - x_at_label
                else:
                    psq_term = p * p
                    ce_term = lse - x_at_label

                return (acc_inter + p * onehot,
                        acc_psq + psq_term,
                        acc_lsum + onehot,
                        acc_ce + ce_term)

            init = (jnp.zeros((num_classes, chunk), jnp.float32),
                    jnp.zeros((num_classes, chunk), jnp.float32),
                    jnp.zeros((num_classes, chunk), jnp.float32),
                    jnp.zeros((1, chunk), jnp.float32))

            if num_chunks == 1:
                acc_inter, acc_psq, acc_lsum, acc_ce = body(jnp.int32(0), init)
            else:
                acc_inter, acc_psq, acc_lsum, acc_ce = jax.lax.fori_loop(
                    0, num_chunks, body, init, unroll=unroll)

            # One lane-dense update of the resident output blocks per tile.
            inter_ref[...] += acc_inter
            psq_ref[...] += acc_psq
            lsum_ref[...] += acc_lsum
            ce_ref[...] += acc_ce

        if not has_edge:
            # Static fast path: every tile is full, no masking anywhere.
            run_tile(False)
        else:
            is_full = (tile_start + tile) <= vs
            is_partial = jnp.logical_and(jnp.logical_not(is_full),
                                         tile_start < vs)

            @pl.when(is_full)
            def _full_tile():
                run_tile(False)

            @pl.when(is_partial)
            def _partial_tile():
                run_tile(True)
            # tile_start >= vs (overflow step of the v7x 2-way split): skip all
            # compute; only the clamped re-read DMA of one block is paid.

    return kernel


@functools.partial(jax.jit, static_argnames=("coef", "tile_v"))
def mixed_loss(logits, labels, coef=(1.0, 1.0), tile_v=None):
    """MixedLoss([DiceLoss, CrossEntropyLoss], coef).forward(logits, labels).

    logits: (N, C, D, H, W) float (f32 or bf16, streamed in native dtype)
    labels: (N, D, H, W)    integer class ids (int8/int16/int32 stream natively;
            pass int8 when C <= 127 to cut label HBM traffic 4x)
    Returns ([dice_loss * coef[0], ce_loss * coef[1]], per_channel_dice).
    """
    # TODO(synk): MixedLoss accepts an arbitrary list of loss modules; this
    # kernel hard-codes the canonical [DiceLoss, CrossEntropyLoss] pair (no
    # ignore_index / class weights; out-of-range labels are not special-cased).
    N, C = logits.shape[0], logits.shape[1]
    spatial = tuple(logits.shape[2:])
    assert labels.shape == (N,) + spatial
    vs = int(np.prod(spatial))          # voxels per batch element
    total_voxels = N * vs

    # Layout-preserving reshapes only: no HBM transpose of the logits and no
    # dtype-conversion pass over the labels (kernel upcasts per chunk).
    if not jnp.issubdtype(labels.dtype, jnp.integer):
        labels = labels.astype(jnp.int32)
    logits_3d = logits.reshape(N, C, vs)
    labels_3d = labels.reshape(N, 1, vs)

    # Per-generation VMEM budget (double-buffered inputs) + scoped-limit cap.
    kind = _tpu_kind()
    is_v7x = ("v7" in kind) or ("tpu7" in kind)
    big_vmem = any(t in kind for t in ("v4", "v5", "v6"))   # 128 MiB parts
    if is_v7x:                       # 64 MiB physical VMEM, 2 TensorCores
        input_budget, vmem_cap = 24 << 20, 56 << 20
    elif big_vmem:                   # v4/v5e/v5p/v6e: 128 MiB, 1 TensorCore
        input_budget, vmem_cap = 48 << 20, 112 << 20
    else:                            # unknown part: stay conservative
        input_budget, vmem_cap = 24 << 20, 48 << 20

    # Lane chunk (vreg-friendly unit) and VMEM-budgeted grid tile.
    chunk = min(_LANE_CHUNK, _round_up(vs, 128))
    max_tile = (vs // chunk) * chunk if vs >= chunk else chunk
    per_lane = (_vmem_lane_bytes(C, jnp.dtype(logits_3d.dtype).itemsize) +
                _vmem_lane_bytes(1, jnp.dtype(labels_3d.dtype).itemsize))
    budget_tile = max(chunk, input_budget // (2 * per_lane))
    req = tile_v if tile_v is not None else budget_tile
    req = max(chunk, min(int(req), max_tile))
    # Re-balance so the last tile is nearly full (minimizes masked waste).
    n_t = _cdiv(vs, req)
    tile = min(max_tile, _round_up(_cdiv(vs, n_t), chunk))
    num_tiles = _cdiv(vs, tile)

    # 2-way voxel split only on dual-TensorCore v7x; on single-TC chips it is a
    # serial loop that only adds masking + an overflow-tile DMA.  The batch
    # axis is also "parallel" (outputs are per (split, batch) row), so v7x can
    # shard by batch when the voxel split collapses.
    num_splits = 2 if (is_v7x and num_tiles >= 2) else 1
    tiles_per_split = _cdiv(num_tiles, num_splits)
    has_edge = (vs % tile != 0) or (num_splits * tiles_per_split != num_tiles)

    grid = (num_splits, N, tiles_per_split)

    def in_map(s, n, i):
        # Clamp so an overflow step on the last split re-reads a valid block;
        # its compute is skipped in-kernel.
        t = jnp.minimum(s * tiles_per_split + i, num_tiles - 1)
        return (n, 0, t)

    def out_map(s, n, i):
        return (s * N + n, 0, 0)

    kernel = _make_stats_kernel(C, vs, tile, chunk, tiles_per_split, has_edge)

    rows = num_splits * N
    out_shapes = (
        jax.ShapeDtypeStruct((rows, C, chunk), jnp.float32),   # sum p*onehot
        jax.ShapeDtypeStruct((rows, C, chunk), jnp.float32),   # sum p^2
        jax.ShapeDtypeStruct((rows, C, chunk), jnp.float32),   # sum onehot
        jax.ShapeDtypeStruct((rows, 1, chunk), jnp.float32),   # sum CE terms
    )

    c8 = _round_up(C, 8)
    in_bytes = 2 * per_lane * tile                  # double-buffered inputs
    out_bytes = 2 * (3 * c8 + 8) * chunk * 4        # resident accumulators
    vmem_limit = int(min(vmem_cap, max(in_bytes + out_bytes + (4 << 20),
                                       8 << 20)))

    inter_p, psq_p, lsum_p, ce_p = pl.pallas_call(
        kernel,
        out_shape=out_shapes,
        grid_spec=pltpu.PrefetchScalarGridSpec(
            num_scalar_prefetch=0,
            grid=grid,
            in_specs=[
                pl.BlockSpec((None, C, tile), in_map),
                pl.BlockSpec((None, 1, tile), in_map),
            ],
            out_specs=[
                pl.BlockSpec((None, C, chunk), out_map),
                pl.BlockSpec((None, C, chunk), out_map),
                pl.BlockSpec((None, C, chunk), out_map),
                pl.BlockSpec((None, 1, chunk), out_map),
            ],
        ),
        compiler_params=pltpu.CompilerParams(
            dimension_semantics=("parallel", "parallel", "arbitrary"),
            vmem_limit_bytes=vmem_limit),
    )(logits_3d, labels_3d)

    # Cheap scalar epilogue in JAX: fold (split, batch) rows + lanes.
    inter = jnp.sum(inter_p, axis=(0, 2))    # (C,)
    psq = jnp.sum(psq_p, axis=(0, 2))        # (C,)
    lsum = jnp.sum(lsum_p, axis=(0, 2))      # (C,)
    ce_total = jnp.sum(ce_p)

    eps = 1e-6
    per_channel_dice = 2.0 * inter / jnp.maximum(psq + lsum, eps)   # (C,)
    dice_loss = 1.0 - jnp.mean(per_channel_dice)
    ce_loss = ce_total / jnp.float32(total_voxels)

    loss_list = [dice_loss * coef[0], ce_loss * coef[1]]
    return loss_list, per_channel_dice


def _reference_mixed_loss(logits, labels, coef=(1.0, 1.0)):
    """Pure-JAX reference mirroring the PyTorch semantics."""
    C = logits.shape[1]
    probs = jax.nn.softmax(logits.astype(jnp.float32), axis=1)
    onehot = jax.nn.one_hot(labels, C, axis=1, dtype=jnp.float32)
    fp = jnp.moveaxis(probs, 1, 0).reshape(C, -1)
    ft = jnp.moveaxis(onehot, 1, 0).reshape(C, -1)
    inter = jnp.sum(fp * ft, axis=-1)
    den = jnp.sum(fp * fp, axis=-1) + jnp.sum(ft * ft, axis=-1)
    pcd = 2.0 * inter / jnp.maximum(den, 1e-6)
    dice_loss = 1.0 - jnp.mean(pcd)
    logp = jax.nn.log_softmax(logits.astype(jnp.float32), axis=1)
    gathered = jnp.take_along_axis(logp, labels[:, None].astype(jnp.int32), axis=1)
    ce_loss = -jnp.mean(gathered)
    return [dice_loss * coef[0], ce_loss * coef[1]], pcd


def _check(logits, labels, tile_v, coef=(1.0, 1.0)):
    loss_list, pcd = mixed_loss(logits, labels, coef=coef, tile_v=tile_v)
    loss_list = [np.asarray(jax.block_until_ready(l)) for l in loss_list]
    pcd = np.asarray(jax.block_until_ready(pcd))

    ref_losses, ref_pcd = _reference_mixed_loss(logits, labels, coef=coef)
    np.testing.assert_allclose(loss_list[0], np.asarray(ref_losses[0]),
                               rtol=1e-4, atol=1e-5)
    np.testing.assert_allclose(loss_list[1], np.asarray(ref_losses[1]),
                               rtol=1e-4, atol=1e-5)
    np.testing.assert_allclose(pcd, np.asarray(ref_pcd), rtol=1e-4, atol=1e-5)


if __name__ == "__main__":
    key = jax.random.PRNGKey(0)
    k1, k2, k3, k4, k5, k6 = jax.random.split(key, 6)
    coef = (0.6, 0.4)

    # Config 1 (NCDHW): N=2, C=4, D=8, H=16, W=16 -> 2048 voxels/item,
    # VMEM-budget-derived tile (single full tile per item, unmasked fast path).
    N, C, D, H, W = 2, 4, 8, 16, 16
    logits = jax.random.normal(k1, (N, C, D, H, W), dtype=jnp.float32)
    labels = jax.random.randint(k2, (N, D, H, W), 0, C, dtype=jnp.int32)
    _check(logits, labels, tile_v=None, coef=coef)

    # Config 2: bf16 logits streamed natively + forced multi-tile walk.
    _check(logits.astype(jnp.bfloat16), labels, tile_v=1024, coef=coef)

    # Config 3: odd tile count (exercises the v7x 2-way split + overflow skip
    # on dual-core parts; plain 3-tile unmasked walk on v5e/v6e).
    logits3 = jax.random.normal(k3, (2, 4, 6, 16, 16), dtype=jnp.float32)
    labels3 = jax.random.randint(k4, (2, 6, 16, 16), 0, 4, dtype=jnp.int32)
    _check(logits3, labels3, tile_v=512, coef=coef)

    # Config 4: volume (5*10*14=700) not divisible by the lane chunk ->
    # masked partial edge tile on every chip generation.
    logits4 = jax.random.normal(k5, (2, 4, 5, 10, 14), dtype=jnp.float32)
    labels4 = jax.random.randint(k6, (2, 5, 10, 14), 0, 4, dtype=jnp.int32)
    _check(logits4, labels4, tile_v=512, coef=coef)

    print("KERNEL_OK")
</pallas_src>

<mosaic_0001>
module attributes {stable_mosaic.version = 11 : i64} {
  func.func @kernel(%arg0: i32, %arg1: i32, %arg2: i32, %arg3: memref<1x4x2048xf32, #tpu.memory_space<vmem>>, %arg4: memref<1x1x2048xi32, #tpu.memory_space<vmem>>, %arg5: memref<1x4x512xf32, #tpu.memory_space<vmem>>, %arg6: memref<1x4x512xf32, #tpu.memory_space<vmem>>, %arg7: memref<1x4x512xf32, #tpu.memory_space<vmem>>, %arg8: memref<1x1x512xf32, #tpu.memory_space<vmem>>) attributes {dimension_semantics = [#tpu.dimension_semantics<parallel>, #tpu.dimension_semantics<parallel>, #tpu.dimension_semantics<arbitrary>], iteration_bounds = array<i64: 1, 2, 1>, scalar_prefetch = 0 : i64, scratch_operands = 0 : i64, tpu.core_type = #tpu.core_type<tc>, window_params = [{transform_indices = @transform_0, window_bounds = array<i64: 1, 4, 2048>}, {transform_indices = @transform_1, window_bounds = array<i64: 1, 1, 2048>}, {transform_indices = @transform_2, window_bounds = array<i64: 1, 4, 512>}, {transform_indices = @transform_3, window_bounds = array<i64: 1, 4, 512>}, {transform_indices = @transform_4, window_bounds = array<i64: 1, 4, 512>}, {transform_indices = @transform_5, window_bounds = array<i64: 1, 1, 512>}]} {
    %c0_i32 = arith.constant 0 : i32
    %0 = arith.cmpi eq, %arg2, %c0_i32 : i32
    %1 = arith.extui %0 : i1 to i32
    %c0_i32_0 = arith.constant 0 : i32
    %2 = arith.cmpi ne, %1, %c0_i32_0 : i32
    scf.if %2 {
      %cst_67 = arith.constant 0.000000e+00 : f32
      %172 = vector.broadcast %cst_67 : f32 to vector<4x512xf32>
      %c0_68 = arith.constant 0 : index
      %c0_69 = arith.constant 0 : index
      %c0_70 = arith.constant 0 : index
      %173 = vector.load %arg5[%c0_68, %c0_69, %c0_70] : memref<1x4x512xf32, #tpu.memory_space<vmem>>, vector<1x4x512xf32>
      %174 = vector.shape_cast %173 : vector<1x4x512xf32> to vector<4x512xf32>
      %175 = vector.shape_cast %172 : vector<4x512xf32> to vector<1x4x512xf32>
      tpu.vector_store %arg5[%c0_68, %c0_69, %c0_70], %175 {strides = array<i32>} : memref<1x4x512xf32, #tpu.memory_space<vmem>>, vector<1x4x512xf32>,
      %cst_71 = arith.constant 0.000000e+00 : f32
      %176 = vector.broadcast %cst_71 : f32 to vector<4x512xf32>
      %c0_72 = arith.constant 0 : index
      %c0_73 = arith.constant 0 : index
      %c0_74 = arith.constant 0 : index
      %177 = vector.load %arg6[%c0_72, %c0_73, %c0_74] : memref<1x4x512xf32, #tpu.memory_space<vmem>>, vector<1x4x512xf32>
      %178 = vector.shape_cast %177 : vector<1x4x512xf32> to vector<4x512xf32>
      %179 = vector.shape_cast %176 : vector<4x512xf32> to vector<1x4x512xf32>
      tpu.vector_store %arg6[%c0_72, %c0_73, %c0_74], %179 {strides = array<i32>} : memref<1x4x512xf32, #tpu.memory_space<vmem>>, vector<1x4x512xf32>,
      %cst_75 = arith.constant 0.000000e+00 : f32
      %180 = vector.broadcast %cst_75 : f32 to vector<4x512xf32>
      %c0_76 = arith.constant 0 : index
      %c0_77 = arith.constant 0 : index
      %c0_78 = arith.constant 0 : index
      %181 = vector.load %arg7[%c0_76, %c0_77, %c0_78] : memref<1x4x512xf32, #tpu.memory_space<vmem>>, vector<1x4x512xf32>
      %182 = vector.shape_cast %181 : vector<1x4x512xf32> to vector<4x512xf32>
      %183 = vector.shape_cast %180 : vector<4x512xf32> to vector<1x4x512xf32>
      tpu.vector_store %arg7[%c0_76, %c0_77, %c0_78], %183 {strides = array<i32>} : memref<1x4x512xf32, #tpu.memory_space<vmem>>, vector<1x4x512xf32>,
      %cst_79 = arith.constant 0.000000e+00 : f32
      %184 = vector.broadcast %cst_79 : f32 to vector<1x512xf32>
      %c0_80 = arith.constant 0 : index
      %c0_81 = arith.constant 0 : index
      %c0_82 = arith.constant 0 : index
      %185 = vector.load %arg8[%c0_80, %c0_81, %c0_82] : memref<1x1x512xf32, #tpu.memory_space<vmem>>, vector<1x1x512xf32>
      %186 = vector.shape_cast %185 : vector<1x1x512xf32> to vector<1x512xf32>
      %187 = vector.shape_cast %184 : vector<1x512xf32> to vector<1x1x512xf32>
      tpu.vector_store %arg8[%c0_80, %c0_81, %c0_82], %187 {strides = array<i32>} : memref<1x1x512xf32, #tpu.memory_space<vmem>>, vector<1x1x512xf32>,
    } else {
    }
    %3 = tpu.iota {dimensions = array<i32: 0>} : vector<4x512xi32>
    %cst = arith.constant 0.000000e+00 : f32
    %4 = vector.broadcast %cst : f32 to vector<4x512xf32>
    %cst_1 = arith.constant 0.000000e+00 : f32
    %5 = vector.broadcast %cst_1 : f32 to vector<4x512xf32>
    %cst_2 = arith.constant 0.000000e+00 : f32
    %6 = vector.broadcast %cst_2 : f32 to vector<4x512xf32>
    %cst_3 = arith.constant 0.000000e+00 : f32
    %7 = vector.broadcast %cst_3 : f32 to vector<1x512xf32>
    %c0_i32_4 = arith.constant 0 : i32
    %c512_i32 = arith.constant 512 : i32
    %8 = arith.muli %c0_i32_4, %c512_i32 : i32
    %9 = tpu.assume_multiple %8, 512 : i32
    %c0 = arith.constant 0 : index
    %c0_5 = arith.constant 0 : index
    %10 = arith.index_cast %9 : i32 to index
    %11 = vector.load %arg3[%c0, %c0_5, %10] : memref<1x4x2048xf32, #tpu.memory_space<vmem>>, vector<1x4x512xf32>
    %12 = vector.shape_cast %11 : vector<1x4x512xf32> to vector<4x512xf32>
    %c0_6 = arith.constant 0 : index
    %c0_7 = arith.constant 0 : index
    %13 = arith.index_cast %9 : i32 to index
    %14 = vector.load %arg4[%c0_6, %c0_7, %13] : memref<1x1x2048xi32, #tpu.memory_space<vmem>>, vector<1x1x512xi32>
    %15 = vector.shape_cast %14 : vector<1x1x512xi32> to vector<1x512xi32>
    %16 = vector.broadcast %15 : vector<1x512xi32> to vector<4x512xi32>
    %17 = arith.cmpi eq, %3, %16 : vector<4x512xi32>
    %cst_8 = arith.constant 1.000000e+00 : f32
    %cst_9 = arith.constant 0.000000e+00 : f32
    %18 = vector.broadcast %cst_8 : f32 to vector<4x512xf32>
    %19 = vector.broadcast %cst_9 : f32 to vector<4x512xf32>
    %20 = arith.select %17, %18, %19 : vector<4x512xi1>, vector<4x512xf32>
    %cst_10 = arith.constant dense<0xFF800000> : vector<512xf32>
    %21 = vector.multi_reduction <maximumf>, %12, %cst_10 [0] : vector<4x512xf32> to vector<512xf32>
    %22 = vector.shape_cast %21 : vector<512xf32> to vector<1x512xf32>
    %23 = vector.broadcast %22 : vector<1x512xf32> to vector<4x512xf32>
    %24 = arith.subf %12, %23 : vector<4x512xf32>
    %25 = math.exp %24 : vector<4x512xf32>
    %cst_11 = arith.constant dense<0.000000e+00> : vector<512xf32>
    %26 = vector.multi_reduction <add>, %25, %cst_11 [0] : vector<4x512xf32> to vector<512xf32>
    %27 = vector.shape_cast %26 : vector<512xf32> to vector<1x512xf32>
    %28 = tpu.reciprocal %27 : vector<1x512xf32> -> vector<1x512xf32>
    %29 = vector.broadcast %28 : vector<1x512xf32> to vector<4x512xf32>
    %30 = arith.mulf %25, %29 : vector<4x512xf32>
    %31 = arith.mulf %12, %20 : vector<4x512xf32>
    %cst_12 = arith.constant dense<0.000000e+00> : vector<512xf32>
    %32 = vector.multi_reduction <add>, %31, %cst_12 [0] : vector<4x512xf32> to vector<512xf32>
    %33 = vector.shape_cast %32 : vector<512xf32> to vector<1x512xf32>
    %34 = math.log %27 : vector<1x512xf32>
    %35 = arith.addf %22, %34 : vector<1x512xf32>
    %36 = arith.mulf %30, %30 : vector<4x512xf32>
    %37 = arith.subf %35, %33 : vector<1x512xf32>
    %38 = arith.mulf %30, %20 : vector<4x512xf32>
    %39 = arith.addf %4, %38 : vector<4x512xf32>
    %40 = arith.addf %5, %36 : vector<4x512xf32>
    %41 = arith.addf %6, %20 : vector<4x512xf32>
    %42 = arith.addf %7, %37 : vector<1x512xf32>
    %c1_i32 = arith.constant 1 : i32
    %c512_i32_13 = arith.constant 512 : i32
    %43 = arith.muli %c1_i32, %c512_i32_13 : i32
    %44 = tpu.assume_multiple %43, 512 : i32
    %c0_14 = arith.constant 0 : index
    %c0_15 = arith.constant 0 : index
    %45 = arith.index_cast %44 : i32 to index
    %46 = vector.load %arg3[%c0_14, %c0_15, %45] : memref<1x4x2048xf32, #tpu.memory_space<vmem>>, vector<1x4x512xf32>
    %47 = vector.shape_cast %46 : vector<1x4x512xf32> to vector<4x512xf32>
    %c0_16 = arith.constant 0 : index
    %c0_17 = arith.constant 0 : index
    %48 = arith.index_cast %44 : i32 to index
    %49 = vector.load %arg4[%c0_16, %c0_17, %48] : memref<1x1x2048xi32, #tpu.memory_space<vmem>>, vector<1x1x512xi32>
    %50 = vector.shape_cast %49 : vector<1x1x512xi32> to vector<1x512xi32>
    %51 = vector.broadcast %50 : vector<1x512xi32> to vector<4x512xi32>
    %52 = arith.cmpi eq, %3, %51 : vector<4x512xi32>
    %cst_18 = arith.constant 1.000000e+00 : f32
    %cst_19 = arith.constant 0.000000e+00 : f32
    %53 = vector.broadcast %cst_18 : f32 to vector<4x512xf32>
    %54 = vector.broadcast %cst_19 : f32 to vector<4x512xf32>
    %55 = arith.select %52, %53, %54 : vector<4x512xi1>, vector<4x512xf32>
    %cst_20 = arith.constant dense<0xFF800000> : vector<512xf32>
    %56 = vector.multi_reduction <maximumf>, %47, %cst_20 [0] : vector<4x512xf32> to vector<512xf32>
    %57 = vector.shape_cast %56 : vector<512xf32> to vector<1x512xf32>
    %58 = vector.broadcast %57 : vector<1x512xf32> to vector<4x512xf32>
    %59 = arith.subf %47, %58 : vector<4x512xf32>
    %60 = math.exp %59 : vector<4x512xf32>
    %cst_21 = arith.constant dense<0.000000e+00> : vector<512xf32>
    %61 = vector.multi_reduction <add>, %60, %cst_21 [0] : vector<4x512xf32> to vector<512xf32>
    %62 = vector.shape_cast %61 : vector<512xf32> to vector<1x512xf32>
    %63 = tpu.reciprocal %62 : vector<1x512xf32> -> vector<1x512xf32>
    %64 = vector.broadcast %63 : vector<1x512xf32> to vector<4x512xf32>
    %65 = arith.mulf %60, %64 : vector<4x512xf32>
    %66 = arith.mulf %47, %55 : vector<4x512xf32>
    %cst_22 = arith.constant dense<0.000000e+00> : vector<512xf32>
    %67 = vector.multi_reduction <add>, %66, %cst_22 [0] : vector<4x512xf32> to vector<512xf32>
    %68 = vector.shape_cast %67 : vector<512xf32> to vector<1x512xf32>
    %69 = math.log %62 : vector<1x512xf32>
    %70 = arith.addf %57, %69 : vector<1x512xf32>
    %71 = arith.mulf %65, %65 : vector<4x512xf32>
    %72 = arith.subf %70, %68 : vector<1x512xf32>
    %73 = arith.mulf %65, %55 : vector<4x512xf32>
    %74 = arith.addf %39, %73 : vector<4x512xf32>
    %75 = arith.addf %40, %71 : vector<4x512xf32>
    %76 = arith.addf %41, %55 : vector<4x512xf32>
    %77 = arith.addf %42, %72 : vector<1x512xf32>
    %c2_i32 = arith.constant 2 : i32
    %c512_i32_23 = arith.constant 512 : i32
    %78 = arith.muli %c2_i32, %c512_i32_23 : i32
    %79 = tpu.assume_multiple %78, 512 : i32
    %c0_24 = arith.constant 0 : index
    %c0_25 = arith.constant 0 : index
    %80 = arith.index_cast %79 : i32 to index
    %81 = vector.load %arg3[%c0_24, %c0_25, %80] : memref<1x4x2048xf32, #tpu.memory_space<vmem>>, vector<1x4x512xf32>
    %82 = vector.shape_cast %81 : vector<1x4x512xf32> to vector<4x512xf32>
    %c0_26 = arith.constant 0 : index
    %c0_27 = arith.constant 0 : index
    %83 = arith.index_cast %79 : i32 to index
    %84 = vector.load %arg4[%c0_26, %c0_27, %83] : memref<1x1x2048xi32, #tpu.memory_space<vmem>>, vector<1x1x512xi32>
    %85 = vector.shape_cast %84 : vector<1x1x512xi32> to vector<1x512xi32>
    %86 = vector.broadcast %85 : vector<1x512xi32> to vector<4x512xi32>
    %87 = arith.cmpi eq, %3, %86 : vector<4x512xi32>
    %cst_28 = arith.constant 1.000000e+00 : f32
    %cst_29 = arith.constant 0.000000e+00 : f32
    %88 = vector.broadcast %cst_28 : f32 to vector<4x512xf32>
    %89 = vector.broadcast %cst_29 : f32 to vector<4x512xf32>
    %90 = arith.select %87, %88, %89 : vector<4x512xi1>, vector<4x512xf32>
    %cst_30 = arith.constant dense<0xFF800000> : vector<512xf32>
    %91 = vector.multi_reduction <maximumf>, %82, %cst_30 [0] : vector<4x512xf32> to vector<512xf32>
    %92 = vector.shape_cast %91 : vector<512xf32> to vector<1x512xf32>
    %93 = vector.broadcast %92 : vector<1x512xf32> to vector<4x512xf32>
    %94 = arith.subf %82, %93 : vector<4x512xf32>
    %95 = math.exp %94 : vector<4x512xf32>
    %cst_31 = arith.constant dense<0.000000e+00> : vector<512xf32>
    %96 = vector.multi_reduction <add>, %95, %cst_31 [0] : vector<4x512xf32> to vector<512xf32>
    %97 = vector.shape_cast %96 : vector<512xf32> to vector<1x512xf32>
    %98 = tpu.reciprocal %97 : vector<1x512xf32> -> vector<1x512xf32>
    %99 = vector.broadcast %98 : vector<1x512xf32> to vector<4x512xf32>
    %100 = arith.mulf %95, %99 : vector<4x512xf32>
    %101 = arith.mulf %82, %90 : vector<4x512xf32>
    %cst_32 = arith.constant dense<0.000000e+00> : vector<512xf32>
    %102 = vector.multi_reduction <add>, %101, %cst_32 [0] : vector<4x512xf32> to vector<512xf32>
    %103 = vector.shape_cast %102 : vector<512xf32> to vector<1x512xf32>
    %104 = math.log %97 : vector<1x512xf32>
    %105 = arith.addf %92, %104 : vector<1x512xf32>
    %106 = arith.mulf %100, %100 : vector<4x512xf32>
    %107 = arith.subf %105, %103 : vector<1x512xf32>
    %108 = arith.mulf %100, %90 : vector<4x512xf32>
    %109 = arith.addf %74, %108 : vector<4x512xf32>
    %110 = arith.addf %75, %106 : vector<4x512xf32>
    %111 = arith.addf %76, %90 : vector<4x512xf32>
    %112 = arith.addf %77, %107 : vector<1x512xf32>
    %c3_i32 = arith.constant 3 : i32
    %c512_i32_33 = arith.constant 512 : i32
    %113 = arith.muli %c3_i32, %c512_i32_33 : i32
    %114 = tpu.assume_multiple %113, 512 : i32
    %c0_34 = arith.constant 0 : index
    %c0_35 = arith.constant 0 : index
    %115 = arith.index_cast %114 : i32 to index
    %116 = vector.load %arg3[%c0_34, %c0_35, %115] : memref<1x4x2048xf32, #tpu.memory_space<vmem>>, vector<1x4x512xf32>
    %117 = vector.shape_cast %116 : vector<1x4x512xf32> to vector<4x512xf32>
    %c0_36 = arith.constant 0 : index
    %c0_37 = arith.constant 0 : index
    %118 = arith.index_cast %114 : i32 to index
    %119 = vector.load %arg4[%c0_36, %c0_37, %118] : memref<1x1x2048xi32, #tpu.memory_space<vmem>>, vector<1x1x512xi32>
    %120 = vector.shape_cast %119 : vector<1x1x512xi32> to vector<1x512xi32>
    %121 = vector.broadcast %120 : vector<1x512xi32> to vector<4x512xi32>
    %122 = arith.cmpi eq, %3, %121 : vector<4x512xi32>
    %cst_38 = arith.constant 1.000000e+00 : f32
    %cst_39 = arith.constant 0.000000e+00 : f32
    %123 = vector.broadcast %cst_38 : f32 to vector<4x512xf32>
    %124 = vector.broadcast %cst_39 : f32 to vector<4x512xf32>
    %125 = arith.select %122, %123, %124 : vector<4x512xi1>, vector<4x512xf32>
    %cst_40 = arith.constant dense<0xFF800000> : vector<512xf32>
    %126 = vector.multi_reduction <maximumf>, %117, %cst_40 [0] : vector<4x512xf32> to vector<512xf32>
    %127 = vector.shape_cast %126 : vector<512xf32> to vector<1x512xf32>
    %128 = vector.broadcast %127 : vector<1x512xf32> to vector<4x512xf32>
    %129 = arith.subf %117, %128 : vector<4x512xf32>
    %130 = math.exp %129 : vector<4x512xf32>
    %cst_41 = arith.constant dense<0.000000e+00> : vector<512xf32>
    %131 = vector.multi_reduction <add>, %130, %cst_41 [0] : vector<4x512xf32> to vector<512xf32>
    %132 = vector.shape_cast %131 : vector<512xf32> to vector<1x512xf32>
    %133 = tpu.reciprocal %132 : vector<1x512xf32> -> vector<1x512xf32>
    %134 = vector.broadcast %133 : vector<1x512xf32> to vector<4x512xf32>
    %135 = arith.mulf %130, %134 : vector<4x512xf32>
    %136 = arith.mulf %117, %125 : vector<4x512xf32>
    %cst_42 = arith.constant dense<0.000000e+00> : vector<512xf32>
    %137 = vector.multi_reduction <add>, %136, %cst_42 [0] : vector<4x512xf32> to vector<512xf32>
    %138 = vector.shape_cast %137 : vector<512xf32> to vector<1x512xf32>
    %139 = math.log %132 : vector<1x512xf32>
    %140 = arith.addf %127, %139 : vector<1x512xf32>
    %141 = arith.mulf %135, %135 : vector<4x512xf32>
    %142 = arith.subf %140, %138 : vector<1x512xf32>
    %143 = arith.mulf %135, %125 : vector<4x512xf32>
    %144 = arith.addf %109, %143 : vector<4x512xf32>
    %145 = arith.addf %110, %141 : vector<4x512xf32>
    %146 = arith.addf %111, %125 : vector<4x512xf32>
    %147 = arith.addf %112, %142 : vector<1x512xf32>
    %c4_i32 = arith.constant 4 : i32
    %c0_43 = arith.constant 0 : index
    %c0_44 = arith.constant 0 : index
    %c0_45 = arith.constant 0 : index
    %148 = vector.load %arg5[%c0_43, %c0_44, %c0_45] : memref<1x4x512xf32, #tpu.memory_space<vmem>>, vector<1x4x512xf32>
    %149 = vector.shape_cast %148 : vector<1x4x512xf32> to vector<4x512xf32>
    %150 = arith.addf %149, %144 : vector<4x512xf32>
    %c0_46 = arith.constant 0 : index
    %c0_47 = arith.constant 0 : index
    %c0_48 = arith.constant 0 : index
    %151 = vector.load %arg5[%c0_46, %c0_47, %c0_48] : memref<1x4x512xf32, #tpu.memory_space<vmem>>, vector<1x4x512xf32>
    %152 = vector.shape_cast %151 : vector<1x4x512xf32> to vector<4x512xf32>
    %153 = vector.shape_cast %150 : vector<4x512xf32> to vector<1x4x512xf32>
    tpu.vector_store %arg5[%c0_46, %c0_47, %c0_48], %153 {strides = array<i32>} : memref<1x4x512xf32, #tpu.memory_space<vmem>>, vector<1x4x512xf32>,
    %c0_49 = arith.constant 0 : index
    %c0_50 = arith.constant 0 : index
    %c0_51 = arith.constant 0 : index
    %154 = vector.load %arg6[%c0_49, %c0_50, %c0_51] : memref<1x4x512xf32, #tpu.memory_space<vmem>>, vector<1x4x512xf32>
    %155 = vector.shape_cast %154 : vector<1x4x512xf32> to vector<4x512xf32>
    %156 = arith.addf %155, %145 : vector<4x512xf32>
    %c0_52 = arith.constant 0 : index
    %c0_53 = arith.constant 0 : index
    %c0_54 = arith.constant 0 : index
    %157 = vector.load %arg6[%c0_52, %c0_53, %c0_54] : memref<1x4x512xf32, #tpu.memory_space<vmem>>, vector<1x4x512xf32>
    %158 = vector.shape_cast %157 : vector<1x4x512xf32> to vector<4x512xf32>
    %159 = vector.shape_cast %156 : vector<4x512xf32> to vector<1x4x512xf32>
    tpu.vector_store %arg6[%c0_52, %c0_53, %c0_54], %159 {strides = array<i32>} : memref<1x4x512xf32, #tpu.memory_space<vmem>>, vector<1x4x512xf32>,
    %c0_55 = arith.constant 0 : index
    %c0_56 = arith.constant 0 : index
    %c0_57 = arith.constant 0 : index
    %160 = vector.load %arg7[%c0_55, %c0_56, %c0_57] : memref<1x4x512xf32, #tpu.memory_space<vmem>>, vector<1x4x512xf32>
    %161 = vector.shape_cast %160 : vector<1x4x512xf32> to vector<4x512xf32>
    %162 = arith.addf %161, %146 : vector<4x512xf32>
    %c0_58 = arith.constant 0 : index
    %c0_59 = arith.constant 0 : index
    %c0_60 = arith.constant 0 : index
    %163 = vector.load %arg7[%c0_58, %c0_59, %c0_60] : memref<1x4x512xf32, #tpu.memory_space<vmem>>, vector<1x4x512xf32>
    %164 = vector.shape_cast %163 : vector<1x4x512xf32> to vector<4x512xf32>
    %165 = vector.shape_cast %162 : vector<4x512xf32> to vector<1x4x512xf32>
    tpu.vector_store %arg7[%c0_58, %c0_59, %c0_60], %165 {strides = array<i32>} : memref<1x4x512xf32, #tpu.memory_space<vmem>>, vector<1x4x512xf32>,
    %c0_61 = arith.constant 0 : index
    %c0_62 = arith.constant 0 : index
    %c0_63 = arith.constant 0 : index
    %166 = vector.load %arg8[%c0_61, %c0_62, %c0_63] : memref<1x1x512xf32, #tpu.memory_space<vmem>>, vector<1x1x512xf32>
    %167 = vector.shape_cast %166 : vector<1x1x512xf32> to vector<1x512xf32>
    %168 = arith.addf %167, %147 : vector<1x512xf32>
    %c0_64 = arith.constant 0 : index
    %c0_65 = arith.constant 0 : index
    %c0_66 = arith.constant 0 : index
    %169 = vector.load %arg8[%c0_64, %c0_65, %c0_66] : memref<1x1x512xf32, #tpu.memory_space<vmem>>, vector<1x1x512xf32>
    %170 = vector.shape_cast %169 : vector<1x1x512xf32> to vector<1x512xf32>
    %171 = vector.shape_cast %168 : vector<1x512xf32> to vector<1x1x512xf32>
    tpu.vector_store %arg8[%c0_64, %c0_65, %c0_66], %171 {strides = array<i32>} : memref<1x1x512xf32, #tpu.memory_space<vmem>>, vector<1x1x512xf32>,
    return
  }
  func.func @transform_0(%arg0: i32, %arg1: i32, %arg2: i32) -> (i32, i32, i32) {
    %c1_i32 = arith.constant 1 : i32
    %0 = arith.muli %arg0, %c1_i32 : i32
    %1 = arith.addi %0, %arg2 : i32
    %c0_i32 = arith.constant 0 : i32
    %2 = arith.minsi %1, %c0_i32 : i32
    %c0_i32_0 = arith.constant 0 : i32
    %c0_i32_1 = arith.constant 0 : i32
    return %arg1, %c0_i32_0, %2 : i32, i32, i32
  }
  func.func @transform_1(%arg0: i32, %arg1: i32, %arg2: i32) -> (i32, i32, i32) {
    %c1_i32 = arith.constant 1 : i32
    %0 = arith.muli %arg0, %c1_i32 : i32
    %1 = arith.addi %0, %arg2 : i32
    %c0_i32 = arith.constant 0 : i32
    %2 = arith.minsi %1, %c0_i32 : i32
    %c0_i32_0 = arith.constant 0 : i32
    %c0_i32_1 = arith.constant 0 : i32
    return %arg1, %c0_i32_0, %2 : i32, i32, i32
  }
  func.func @transform_2(%arg0: i32, %arg1: i32, %arg2: i32) -> (i32, i32, i32) {
    %c2_i32 = arith.constant 2 : i32
    %0 = arith.muli %arg0, %c2_i32 : i32
    %1 = arith.addi %0, %arg1 : i32
    %c0_i32 = arith.constant 0 : i32
    %c0_i32_0 = arith.constant 0 : i32
    %c0_i32_1 = arith.constant 0 : i32
    return %1, %c0_i32, %c0_i32_0 : i32, i32, i32
  }
  func.func @transform_3(%arg0: i32, %arg1: i32, %arg2: i32) -> (i32, i32, i32) {
    %c2_i32 = arith.constant 2 : i32
    %0 = arith.muli %arg0, %c2_i32 : i32
    %1 = arith.addi %0, %arg1 : i32
    %c0_i32 = arith.constant 0 : i32
    %c0_i32_0 = arith.constant 0 : i32
    %c0_i32_1 = arith.constant 0 : i32
    return %1, %c0_i32, %c0_i32_0 : i32, i32, i32
  }
  func.func @transform_4(%arg0: i32, %arg1: i32, %arg2: i32) -> (i32, i32, i32) {
    %c2_i32 = arith.constant 2 : i32
    %0 = arith.muli %arg0, %c2_i32 : i32
    %1 = arith.addi %0, %arg1 : i32
    %c0_i32 = arith.constant 0 : i32
    %c0_i32_0 = arith.constant 0 : i32
    %c0_i32_1 = arith.constant 0 : i32
    return %1, %c0_i32, %c0_i32_0 : i32, i32, i32
  }
  func.func @transform_5(%arg0: i32, %arg1: i32, %arg2: i32) -> (i32, i32, i32) {
    %c2_i32 = arith.constant 2 : i32
    %0 = arith.muli %arg0, %c2_i32 : i32
    %1 = arith.addi %0, %arg1 : i32
    %c0_i32 = arith.constant 0 : i32
    %c0_i32_0 = arith.constant 0 : i32
    %c0_i32_1 = arith.constant 0 : i32
    return %1, %c0_i32, %c0_i32_0 : i32, i32, i32
  }
}

</mosaic_0001>

<bundles_post_ra>
// kernel: mixed_loss.1
= control target key start
LH: loop header
LB: loop body
LE: loop exit
PB: predicated region body
PF: predicated region fallthrough
CT: control target
= control target key end

     0   :  { %s1701_s18 = smov 0   ;;  %s1703_s19 = smov 0   ;;  %s2397_s0 = inlined_call_operand.vmem [shape: f32[2,4,2048], index: 0, kind: input, shape index: {}]   ;;  %s2398_s1 = inlined_call_operand.vmem [shape: s32[2,1,2048], index: 1, kind: input, shape index: {}]   ;;  %s2399_s2 = inlined_call_operand.vmem [shape: f32[2,4,512], index: 2, kind: output, shape index: {0}]   ;;  %s2400_s3 = inlined_call_operand.vmem [shape: f32[2,4,512], index: 3, kind: output, shape index: {1}]   ;;  %s2401_s4 = inlined_call_operand.vmem [shape: f32[2,4,512], index: 4, kind: output, shape index: {2}]   ;;  %s2402_s5 = inlined_call_operand.vmem [shape: f32[2,1,512], index: 5, kind: output, shape index: {3}]  }
   0x1   :  { %s1705_s20 = smov 0  }
   0x2 LB: > { %s31_s21 = sadd.s32 1, %s1663_s19  ;;  %p1505_p0 = scmp.ge.s32.totalorder %s1667_s20, 1  ;;  %s1667_s20 = sphi %s1705_s20, %s16_s20   ;;  %s1663_s19 = sphi %s1703_s19, %s2495_s19   ;;  %s1659_s18 = sphi %s1701_s18, %s2494_s18  }
   0x3   : > { %p33_p1 = scmp.ge.s32.totalorder %s31_s21, 2  ;;  %p276_p2 = scmp.lt.s32.totalorder %s1667_s20, 3 }
   0x5   : > { %s2497_s21 = smov (%p33_p1, %s31_s21), 0  ;;  %p277_p3 = pnand %p1505_p0, %p276_p2 }
   0x7   : > { %280 = sbr.rel (%p277_p3) target bundleno = 191 (0xbf), region = 28 }
   0xc   : > { %p348_p4 = scmp.lt.s32.totalorder %s1659_s18, 1  ;;  %v420_v0 = vlaneseq  ;;  %vm460_vm0 = vcmask 1043456   ;;  %v2428_v7 = vmov 0  ;;  %v2403_v18 = vmov 0.0  }
   0xe   : > { %s2499_s18 = smov (!%p348_p4, %s1659_s18), 1  ;;  %v1719_v1 = vshrl.u32 %v420_v0, 7  ;;  %vm1747_vm1 = vcmp.lt.s32.totalorder %v420_v0, 512 }
   0xf   : > { %s1527_s22 = sshll.u32 %s2499_s18, 6  ;;  %s1721_s23 = sshll.u32 %s2499_s18, 4  ;;  %v2429_v7 = vsel %vm1747_vm1, 4294967295, %v2428_v7 }
  0x10   : > { %v1724_v2 = vsub.s32 0, %v1719_v1  ;;  %v1727_v3 = vsub.s32 1, %v1719_v1  ;;  %v1730_v4 = vsub.s32 2, %v1719_v1  ;;  %v1733_v5 = vsub.s32 3, %v1719_v1  ;;  %s1738_s26 = scalar_lea.vmem %s2397_s0, %s1527_s22  ;;  %s1744_s29 = scalar_lea.vmem %s2398_s1, %s1721_s23  ;;  %2430 = vst [vmem:[#allocation2_spill] sm:$0xff] %v2429_v7 }
  0x11   : > { %v429_v6 = vld [vmem:[%s1744_s29] sm:$0xf]  ;;  %s1515_s30 = sshll.u32 %s2499_s18, 2  ;;  %v1755_v9 = vld [vmem:[%s1738_s26 + $0x8] sm:$0xff]  ;;  %v1518_v19 = vld [vmem:[%s1744_s29 + $0x4] sm:$0xf]  ;;  %s2313_s11 = scalar_lea.vmem %s2401_s4, %s1721_s23 }
  0x12   : > { %v1752_v8 = vld [vmem:[%s1738_s26] sm:$0xff]  ;;  %v433_v10 = vrot.slane %v429_v6, %v1724_v2  ;;  %v437_v11 = vrot.slane %v429_v6, %v1727_v3  ;;  %v441_v12 = vrot.slane %v429_v6, %v1730_v4  ;;  %v445_v13 = vrot.slane %v429_v6, %v1733_v5  ;;  %s1764_s8 = scalar_lea.vmem %s2402_s5, %s1515_s30  ;;  %s381_s14 = scalar_lea.vmem %s2399_s2, %s1721_s23 }
  0x13   : > { %v456_v14 = vcombine.high %v1752_v8, %v1752_v8  ;;  %v457_v15 = vcombine.high %v1755_v9, %v1755_v9  ;;  %v461_v16 = vsel %vm460_vm0, %v1752_v8, -inf  ;;  %v475_v17 = vsel %vm460_vm0, %v1755_v9, -inf  ;;  %424 = vst.msk [vmem:[%s1764_s8] sm:$0xf] %vm1747_vm1, %v2403_v18  ;;  %s390_s17 = scalar_lea.vmem %s2400_s3, %s1721_s23 }
  0x14   : > { %vm446_vm2 = vcmp.eq.s32.totalorder %v1719_v1, %v433_v10  ;;  %vm447_vm3 = vcmp.eq.s32.totalorder %v1719_v1, %v437_v11  ;;  %vm448_vm4 = vcmp.eq.s32.totalorder %v1719_v1, %v441_v12  ;;  %vm449_vm5 = vcmp.eq.s32.totalorder %v1719_v1, %v445_v13 }
  0x15   : > { %v1784_v20 = vsel %vm446_vm2, 1.0, %v2403_v18  ;;  %v1787_v21 = vsel %vm447_vm3, 1.0, %v2403_v18  ;;  %v1790_v22 = vsel %vm448_vm4, 1.0, %v2403_v18  ;;  %v1793_v23 = vsel %vm449_vm5, 1.0, %v2403_v18 }
  0x16   : > { %2431 = vst [vmem:[#allocation3_spill] sm:$0xff] %v1787_v21  ;;  %2432 = vst [vmem:[#allocation4_spill] sm:$0xff] %v1790_v22  ;;  %v462_v24 = vrot.slane %v461_v16, 4  ;;  %v468_v25 = vsel %vm460_vm0, %v456_v14, -inf  ;;  %v476_v26 = vrot.slane %v475_v17, 4  ;;  %v482_v27 = vsel %vm460_vm0, %v457_v15, -inf }
  0x17   : > { %2433 = vst [vmem:[#allocation5_spill] sm:$0xff] %v1793_v23  ;;  %v469_v28 = vrot.slane %v468_v25, 4  ;;  %v483_v29 = vrot.slane %v482_v27, 4  ;;  %v1799_v30 = vcombine.low %v1784_v20, %v1787_v21  ;;  %v1803_v31 = vcombine.low %v1790_v22, %v1793_v23 }
  0x18   : > { %v463_v32 = vmax.f32 %v461_v16, %v462_v24  ;;  %v477_v33 = vmax.f32 %v475_v17, %v476_v26  ;;  %v635_v34 = vrot.slane %v1518_v19, %v1724_v2  ;;  %v639_v35 = vrot.slane %v1518_v19, %v1727_v3 }
  0x19   : > { %2434 = vst [vmem:[#allocation6_spill] sm:$0xff] %v1799_v30  ;;  %2435 = vst [vmem:[#allocation7_spill] sm:$0xff] %v1803_v31  ;;  %v470_v36 = vmax.f32 %v468_v25, %v469_v28  ;;  %v484_v37 = vmax.f32 %v482_v27, %v483_v29  ;;  %v559_v38 = vmul.f32 %v1799_v30, %v1752_v8 }
  0x1a   : > { %v560_v39 = vmul.f32 %v1803_v31, %v1755_v9  ;;  %v464_v40 = vrot.slane %v463_v32, 2  ;;  %v478_v41 = vrot.slane %v477_v33, 2  ;;  %v643_v42 = vrot.slane %v1518_v19, %v1730_v4 }
  0x1b   : > { %v647_v43 = vrot.slane %v1518_v19, %v1733_v5  ;;  %v471_v44 = vrot.slane %v470_v36, 2  ;;  %v485_v45 = vrot.slane %v484_v37, 2  ;;  %v563_v46 = vcombine.high %v559_v38, %v559_v38 }
  0x1c   : > { %v564_v47 = vcombine.high %v560_v39, %v560_v39  ;;  %v465_v48 = vmax.f32 %v463_v32, %v464_v40  ;;  %v479_v49 = vmax.f32 %v477_v33, %v478_v41  ;;  %v567_v50 = vsel %vm460_vm0, %v559_v38, 0.0  ;;  %v1844_v32 = vld [vmem:[%s1738_s26 + $0x10] sm:$0xff]  ;;  %v1847_v33 = vld [vmem:[%s1738_s26 + $0x18] sm:$0xff] }
  0x1d   : > { %v581_v51 = vsel %vm460_vm0, %v560_v39, 0.0  ;;  %v472_v52 = vmax.f32 %v470_v36, %v471_v44  ;;  %v486_v53 = vmax.f32 %v484_v37, %v485_v45  ;;  %v568_v54 = vrot.slane %v567_v50, 4 }
  0x1e   : > { %v574_v55 = vsel %vm460_vm0, %v563_v46, 0.0  ;;  %v466_v56 = vrot.slane %v465_v48, 1  ;;  %v480_v57 = vrot.slane %v479_v49, 1  ;;  %v582_v59 = vrot.slane %v581_v51, 4 }
  0x1f   : > { %v575_v58 = vrot.slane %v574_v55, 4  ;;  %v473_v60 = vrot.slane %v472_v52, 1  ;;  %v487_v61 = vrot.slane %v486_v53, 1  ;;  %v569_v62 = vadd.f32 %v568_v54, %v567_v50 }
  0x20   : > { %v588_v63 = vsel %vm460_vm0, %v564_v47, 0.0  ;;  %v1817_v0 = vmax.f32 %v465_v48, %v466_v56  ;;  %v1819_v6 = vmax.f32 %v479_v49, %v480_v57  ;;  %v583_v11 = vadd.f32 %v582_v59, %v581_v51 }
  0x21   : > { %v576_v10 = vadd.f32 %v575_v58, %v574_v55  ;;  %v1821_v12 = vmax.f32 %v472_v52, %v473_v60  ;;  %v1823_v13 = vmax.f32 %v486_v53, %v487_v61  ;;  %v589_v14 = vrot.slane %v588_v63, 4 }
  0x22   : > { %vm1826_vm6 = vcmp.eq.s32.totalorder %v1719_v1, %v635_v34  ;;  %vm1831_vm7 = vcmp.eq.s32.totalorder %v1719_v1, %v639_v35  ;;  %v570_v24 = vrot.slane %v569_v62, 2  ;;  %v584_v26 = vrot.slane %v583_v11, 2 }
  0x23   : > { %v493_v17 = vcombine.low %v1817_v0, %v1821_v12  ;;  %v494_v19 = vcombine.low %v1819_v6, %v1823_v13  ;;  %v577_v25 = vrot.slane %v576_v10, 2  ;;  %vm650_vm8 = vcmp.eq.s32.totalorder %v1719_v1, %v643_v42 }
  0x24   : > { %vm651_vm9 = vcmp.eq.s32.totalorder %v1719_v1, %v647_v43  ;;  %v590_v29 = vadd.f32 %v589_v14, %v588_v63  ;;  %v1852_v36 = vsel %vm1826_vm6, 1.0, %v2403_v18  ;;  %v1857_v37 = vsel %vm1831_vm7, 1.0, %v2403_v18  ;;  %v1870_v43 = vld [vmem:[%s1744_s29 + $0x8] sm:$0xf] }
  0x25   : > { %v497_v27 = vsub.f32 %v1752_v8, %v493_v17  ;;  %v498_v28 = vsub.f32 %v1755_v9, %v494_v19  ;;  %2440 = vst [vmem:[#allocation8_spill] sm:$0xff] %v1857_v37  ;;  %v571_v8 = vadd.f32 %v570_v24, %v569_v62  ;;  %v578_v9 = vadd.f32 %v577_v25, %v576_v10 }
  0x26   : > { %v585_v38 = vadd.f32 %v584_v26, %v583_v11  ;;  %v1860_v39 = vsel %vm650_vm8, 1.0, %v2403_v18  ;;  %v1863_v40 = vsel %vm651_vm9, 1.0, %v2403_v18  ;;  %v658_v41 = vcombine.high %v1844_v32, %v1844_v32 }
  0x27   : > { %v499_v34 = vmul.f32 1.442695, %v497_v27  ;;  %v501_v35 = vmul.f32 1.442695, %v498_v28  ;;  %2441 = vst [vmem:[#allocation9_spill] sm:$0xff] %v1860_v39  ;;  %2442 = vst [vmem:[#allocation10_spill] sm:$0xff] %v1863_v40  ;;  %v659_v42 = vcombine.high %v1847_v33, %v1847_v33  ;;  %v1878_v46 = vcombine.low %v1852_v36, %v1857_v37 }
  0x28   : > { %v662_v44 = vsel %vm460_vm0, %v1844_v32, -inf  ;;  %v676_v45 = vsel %vm460_vm0, %v1847_v33, -inf  ;;  %v591_v47 = vrot.slane %v590_v29, 2  ;;  %v669_v49 = vsel %vm460_vm0, %v658_v41, -inf }
  0x29   : > { %1565 = vpow2.f32 %v499_v34  ;;  %2443 = vst [vmem:[#allocation11_spill] sm:$0xff] %v1878_v46  ;;  %v663_v48 = vrot.slane %v662_v44, 4  ;;  %v677_v50 = vrot.slane %v676_v45, 4  ;;  %v670_v51 = vrot.slane %v669_v49, 4 }
  0x2a   : > { %1567 = vpow2.f32 %v501_v35  ;;  %v683_v52 = vsel %vm460_vm0, %v659_v42, -inf  ;;  %v1884_v53 = vcombine.low %v1860_v39, %v1863_v40  ;;  %v760_v54 = vmul.f32 %v1844_v32, %v1878_v46 }
  0x2b   : > { %v664_v55 = vmax.f32 %v662_v44, %v663_v48  ;;  %v678_v56 = vmax.f32 %v676_v45, %v677_v50  ;;  %v684_v57 = vrot.slane %v683_v52, 4  ;;  %v671_v59 = vmax.f32 %v669_v49, %v670_v51 }
  0x2c   : > { %2444 = vst [vmem:[#allocation12_spill] sm:$0xff] %v1884_v53  ;;  %v761_v60 = vmul.f32 %v1847_v33, %v1884_v53  ;;  %v764_v61 = vcombine.high %v760_v54, %v760_v54  ;;  %v768_v62 = vsel %vm460_vm0, %v760_v54, 0.0  ;;  %v572_v15 = vrot.slane %v571_v8, 1 }
  0x2d   : > { %v665_v63 = vrot.slane %v664_v55, 2  ;;  %v679_v10 = vrot.slane %v678_v56, 2  ;;  %v685_v11 = vmax.f32 %v683_v52, %v684_v57  ;;  %v769_v14 = vrot.slane %v768_v62, 4 }
  0x2e   : > { %v579_v16 = vrot.slane %v578_v9, 1  ;;  %v586_v17 = vrot.slane %v585_v38, 1  ;;  %v672_v19 = vrot.slane %v671_v59, 2  ;;  %v592_v24 = vadd.f32 %v591_v47, %v590_v29 }
  0x2f   : > { %v666_v25 = vmax.f32 %v664_v55, %v665_v63  ;;  %v680_v26 = vmax.f32 %v678_v56, %v679_v10  ;;  %v686_v27 = vrot.slane %v685_v11, 2  ;;  %v765_v34 = vcombine.high %v761_v60, %v761_v60 }
  0x30   : > { %v673_v28 = vmax.f32 %v671_v59, %v672_v19  ;;  %v775_v35 = vsel %vm460_vm0, %v764_v61, 0.0  ;;  %v782_v41 = vsel %vm460_vm0, %v761_v60, 0.0  ;;  %v770_v48 = vadd.f32 %v769_v14, %v768_v62 }
  0x31   : > { %v667_v42 = vrot.slane %v666_v25, 1  ;;  %v681_v44 = vrot.slane %v680_v26, 1  ;;  %v687_v45 = vmax.f32 %v685_v11, %v686_v27  ;;  %v1895_v49 = vadd.f32 %v572_v15, %v571_v8 }
  0x32   : > { %v1897_v50 = vadd.f32 %v579_v16, %v578_v9  ;;  %v1899_v51 = vadd.f32 %v586_v17, %v585_v38  ;;  %v674_v29 = vrot.slane %v673_v28, 1  ;;  %v776_v55 = vrot.slane %v775_v35, 4 }
  0x33   : > { %v1901_v47 = vmax.f32 %v666_v25, %v667_v42  ;;  %v1903_v52 = vmax.f32 %v680_v26, %v681_v44  ;;  %v688_v54 = vrot.slane %v687_v45, 1  ;;  %v593_v57 = vrot.slane %v592_v24, 1 }
  0x34   : > { %v1907_v59 = vmax.f32 %v673_v28, %v674_v29  ;;  %v783_v60 = vrot.slane %v782_v41, 4  ;;  %v789_v8 = vsel %vm460_vm0, %v765_v34, 0.0  ;;  %v771_v63 = vrot.slane %v770_v48, 2 }
  0x35   : > { %v1916_v62 = vmax.f32 %v687_v45, %v688_v54  ;;  %v777_v25 = vadd.f32 %v776_v55, %v775_v35  ;;  %v1930_v31 = vadd.f32 %v593_v57, %v592_v24  ;;  %v840_v57 = vrot.slane %v1870_v43, %v1727_v3 }
  0x36   : > { %v1905_v56 = vpop.eup %1565  ;;  %v694_v15 = vcombine.low %v1901_v47, %v1907_v59  ;;  %v784_v29 = vadd.f32 %v783_v60, %v782_v41 }
  0x37   : > { %2445 = vst [vmem:[#allocation13_spill] sm:$0xff] %v1905_v56  ;;  %v1910_v61 = vpop.eup %1567  ;;  %v505_v9 = vcombine.high %v1905_v56, %v1905_v56  ;;  %v509_v38 = vsel %vm460_vm0, %v1905_v56, 0.0  ;;  %v695_v19 = vcombine.low %v1903_v52, %v1916_v62  ;;  %vm850_vm11 = vcmp.eq.s32.totalorder %v1719_v1, %v840_v57 }
  0x38   : > { %2446 = vst [vmem:[#allocation14_spill] sm:$0xff] %v1910_v61  ;;  %v506_v10 = vcombine.high %v1910_v61, %v1910_v61  ;;  %v510_v11 = vrot.slane %v509_v38, 4  ;;  %v523_v14 = vsel %vm460_vm0, %v1910_v61, 0.0  ;;  %v698_v34 = vsub.f32 %v1844_v32, %v694_v15 }
  0x39   : > { %v516_v16 = vsel %vm460_vm0, %v505_v9, 0.0  ;;  %v524_v17 = vrot.slane %v523_v14, 4  ;;  %v699_v45 = vsub.f32 %v1847_v33, %v695_v19  ;;  %v790_v9 = vrot.slane %v789_v8, 4 }
  0x3a   : > { %v511_v26 = vadd.f32 %v510_v11, %v509_v38  ;;  %v517_v27 = vrot.slane %v516_v16, 4  ;;  %v530_v28 = vsel %vm460_vm0, %v506_v10, 0.0  ;;  %v700_v58 = vmul.f32 1.442695, %v698_v34 }
  0x3b   : > { %v525_v42 = vadd.f32 %v524_v17, %v523_v14  ;;  %v531_v44 = vrot.slane %v530_v28, 4  ;;  %v702_v35 = vmul.f32 1.442695, %v699_v45  ;;  %v778_v10 = vrot.slane %v777_v25, 2 }
  0x3c   : > { %v512_v54 = vrot.slane %v511_v26, 2  ;;  %v518_v18 = vadd.f32 %v517_v27, %v516_v16  ;;  %1569 = vpow2.f32 %v700_v58  ;;  %v1932_v14 = vadd.f32 %v771_v63, %v770_v48  ;;  %v1962_v27 = vld [vmem:[%s1738_s26 + $0x28] sm:$0xff] }
  0x3d   : > { %v526_v7 = vrot.slane %v525_v42, 2  ;;  %v532_v53 = vadd.f32 %v531_v44, %v530_v28  ;;  %1571 = vpow2.f32 %v702_v35  ;;  %v785_v60 = vrot.slane %v784_v29, 2  ;;  %v1989_v35 = vld [vmem:[%s1744_s29 + $0xc] sm:$0xf] }
  0x3e   : > { %v513_v55 = vadd.f32 %v512_v54, %v511_v26  ;;  %v519_v38 = vrot.slane %v518_v18, 2  ;;  %v1934_v15 = vadd.f32 %v790_v9, %v789_v8  ;;  %v844_v58 = vrot.slane %v1870_v43, %v1730_v4 }
  0x3f   : > { %v527_v11 = vadd.f32 %v526_v7, %v525_v42  ;;  %v533_v32 = vrot.slane %v532_v53, 2  ;;  %v1942_v48 = vadd.f32 %v778_v10, %v777_v25  ;;  %v1956_v26 = vadd.f32 %v785_v60, %v784_v29  ;;  %v1959_v25 = vld [vmem:[%s1738_s26 + $0x20] sm:$0xff] }
  0x40   : > { %v514_v33 = vrot.slane %v513_v55, 1  ;;  %v520_v41 = vadd.f32 %v519_v38, %v518_v18  ;;  %v848_v18 = vrot.slane %v1870_v43, %v1733_v5  ;;  %vm851_vm12 = vcmp.eq.s32.totalorder %v1719_v1, %v844_v58 }
  0x41   : > { %v528_v16 = vrot.slane %v527_v11, 1  ;;  %v534_v24 = vadd.f32 %v533_v32, %v532_v53  ;;  %v2448_v53 = vrot.slane %v1870_v43, %v1724_v2  ;;  %v2450_v43 = vmov 0.0  }
  0x42   : > { %v1940_v7 = vadd.f32 %v514_v33, %v513_v55  ;;  %v521_v17 = vrot.slane %v520_v41, 1  ;;  %vm852_vm13 = vcmp.eq.s32.totalorder %v1719_v1, %v848_v18  ;;  %v1975_v44 = vsel %vm850_vm11, 1.0, %v2450_v43 }
  0x43   : > { %v1946_v8 = vadd.f32 %v528_v16, %v527_v11  ;;  %v535_v63 = vrot.slane %v534_v24, 1  ;;  %vm849_vm10 = vcmp.eq.s32.totalorder %v1719_v1, %v2448_v53  ;;  %2452 = vst [vmem:[#allocation18_spill] sm:$0xff] %v1975_v44  ;;  %v1978_v45 = vsel %vm851_vm12, 1.0, %v2450_v43 }
  0x44   : > { %v1953_v19 = vadd.f32 %v521_v17, %v520_v41  ;;  %1573 = vlog2.f32 %v1940_v7  ;;  %v1970_v34 = vsel %vm849_vm10, 1.0, %v2450_v43  ;;  %2453 = vst [vmem:[#allocation19_spill] sm:$0xff] %v1978_v45  ;;  %v1982_v29 = vsel %vm852_vm13, 1.0, %v2450_v43 }
  0x45   : > { %2447 = vst [vmem:[#allocation15_spill] sm:$0xff] %v1946_v8  ;;  %v1965_v28 = vadd.f32 %v535_v63, %v534_v24  ;;  %1575 = vlog2.f32 %v1946_v8  ;;  %2451 = vst [vmem:[#allocation17_spill] sm:$0xff] %v1970_v34  ;;  %v859_v54 = vcombine.high %v1959_v25, %v1959_v25  ;;  %v860_v9 = vcombine.high %v1962_v27, %v1962_v27 }
  0x46   : > { %1577 = vlog2.f32 %v1953_v19  ;;  %2454 = vst [vmem:[#allocation20_spill] sm:$0xff] %v1982_v29  ;;  %v863_v55 = vsel %vm460_vm0, %v1959_v25, -inf  ;;  %v877_v38 = vsel %vm460_vm0, %v1962_v27, -inf  ;;  %v1997_v10 = vcombine.low %v1970_v34, %v1975_v44 }
  0x47   : > { %2449 = vst [vmem:[#allocation16_spill] sm:$0xff] %v1965_v28  ;;  %1579 = vlog2.f32 %v1965_v28  ;;  %v2001_v11 = vcombine.low %v1978_v45, %v1982_v29  ;;  %v864_v32 = vrot.slane %v863_v55, 4  ;;  %v870_v33 = vsel %vm460_vm0, %v859_v54, -inf }
  0x48   : > { %2455 = vst [vmem:[#allocation21_spill] sm:$0xff] %v1997_v10  ;;  %v878_v41 = vrot.slane %v877_v38, 4  ;;  %v884_v60 = vsel %vm460_vm0, %v860_v9, -inf  ;;  %v871_v16 = vrot.slane %v870_v33, 4  ;;  %v2007_v57 = vmul.f32 %v1959_v25, %v1997_v10 }
  0x49   : > { %2456 = vst [vmem:[#allocation22_spill] sm:$0xff] %v2001_v11  ;;  %v885_v24 = vrot.slane %v884_v60, 4  ;;  %v2011_v58 = vmul.f32 %v1962_v27, %v2001_v11  ;;  %v2013_v17 = vpop.eup %1569  ;;  %v865_v18 = vmax.f32 %v863_v55, %v864_v32 }
  0x4a   : > { %2457 = vst [vmem:[#allocation23_spill] sm:$0xff] %v2013_v17  ;;  %v879_v63 = vmax.f32 %v877_v38, %v878_v41  ;;  %v2019_v9 = vpop.eup %1571  ;;  %v706_v42 = vcombine.high %v2013_v17, %v2013_v17  ;;  %v710_v61 = vsel %vm460_vm0, %v2013_v17, 0.0  ;;  %v872_v11 = vmax.f32 %v870_v33, %v871_v16 }
  0x4b   : > { %2458 = vst [vmem:[#allocation24_spill] sm:$0xff] %v2019_v9  ;;  %v886_v10 = vmax.f32 %v884_v60, %v885_v24  ;;  %v707_v55 = vcombine.high %v2019_v9, %v2019_v9  ;;  %v711_v38 = vrot.slane %v710_v61, 4  ;;  %v724_v32 = vsel %vm460_vm0, %v2019_v9, 0.0 }
  0x4c   : > { %v866_v41 = vrot.slane %v865_v18, 2  ;;  %v717_v54 = vsel %vm460_vm0, %v706_v42, 0.0  ;;  %v725_v53 = vrot.slane %v724_v32, 4  ;;  %v873_v46 = vrot.slane %v872_v11, 2 }
  0x4d   : > { %v880_v30 = vrot.slane %v879_v63, 2  ;;  %v712_v56 = vadd.f32 %v711_v38, %v710_v61  ;;  %v718_v29 = vrot.slane %v717_v54, 4  ;;  %v731_v45 = vsel %vm460_vm0, %v707_v55, 0.0 }
  0x4e   : > { %v867_v17 = vmax.f32 %v865_v18, %v866_v41  ;;  %v726_v33 = vadd.f32 %v725_v53, %v724_v32  ;;  %v732_v60 = vrot.slane %v731_v45, 4  ;;  %v874_v16 = vmax.f32 %v872_v11, %v873_v46 }
  0x4f   : > { %v881_v24 = vmax.f32 %v879_v63, %v880_v30  ;;  %v713_v23 = vrot.slane %v712_v56, 2  ;;  %v719_v28 = vadd.f32 %v718_v29, %v717_v54  ;;  %v887_v9 = vrot.slane %v886_v10, 2 }
  0x50   : > { %v868_v39 = vrot.slane %v867_v17, 1  ;;  %v727_v42 = vrot.slane %v726_v33, 2  ;;  %v733_v44 = vadd.f32 %v732_v60, %v731_v45  ;;  %v875_v34 = vrot.slane %v874_v16, 1 }
  0x51   : > { %v1574_v40 = vpop.eup %1573  ;;  %v714_v38 = vadd.f32 %v713_v23, %v712_v56  ;;  %v720_v21 = vrot.slane %v719_v28, 2  ;;  %v888_v41 = vmax.f32 %v886_v10, %v887_v9  ;;  %v965_v60 = vcombine.high %v2007_v57, %v2007_v57 }
  0x52   : > { %v1576_v22 = vpop.eup %1575  ;;  %v596_v8 = vmul.f32 0.6931472, %v1574_v40  ;;  %v2031_v55 = vmax.f32 %v867_v17, %v868_v39  ;;  %v728_v46 = vadd.f32 %v727_v42, %v726_v33  ;;  %v734_v29 = vrot.slane %v733_v44, 2 }
  0x53   : > { %v1578_v37 = vpop.eup %1577  ;;  %v600_v61 = vmul.f32 0.6931472, %v1576_v22  ;;  %v715_v40 = vrot.slane %v714_v38, 1  ;;  %v721_v45 = vadd.f32 %v720_v21, %v719_v28  ;;  %v2055_v28 = vmax.f32 %v874_v16, %v875_v34 }
  0x54   : > { %v1580_v18 = vpop.eup %1579  ;;  %v598_v53 = vmul.f32 0.6931472, %v1578_v37  ;;  %v2034_v30 = vadd.f32 %v596_v8, %v1817_v0  ;;  %v729_v23 = vrot.slane %v728_v46, 1  ;;  %v735_v39 = vadd.f32 %v734_v29, %v733_v44 }
  0x55   : > { %v602_v11 = vmul.f32 0.6931472, %v1580_v18  ;;  %v2037_v63 = vadd.f32 %v600_v61, %v1819_v6  ;;  %v2049_v56 = vadd.f32 %v715_v40, %v714_v38  ;;  %v722_v6 = vrot.slane %v721_v45, 1 }
  0x56   : > { %v2040_v54 = vadd.f32 %v598_v53, %v1821_v12  ;;  %v609_v22 = vsub.f32 %v2034_v30, %v1895_v49  ;;  %v2053_v8 = vadd.f32 %v729_v23, %v728_v46  ;;  %v736_v12 = vrot.slane %v735_v39, 1 }
  0x57   : > { %v2045_v37 = vadd.f32 %v602_v11, %v1823_v13  ;;  %v611_v0 = vsub.f32 %v2037_v63, %v1899_v51  ;;  %v2059_v17 = vadd.f32 %v722_v6, %v721_v45  ;;  %1581 = vlog2.f32 %v2049_v56 }
  0x58   : > { %v610_v21 = vsub.f32 %v2040_v54, %v1897_v50  ;;  %v882_v13 = vrot.slane %v881_v24, 1  ;;  %v2062_v32 = vadd.f32 %v736_v12, %v735_v39  ;;  %1583 = vlog2.f32 %v2053_v8 }
  0x59   : > { %v612_v44 = vsub.f32 %v2045_v37, %v1930_v31  ;;  %v895_v33 = vcombine.low %v2031_v55, %v2055_v28  ;;  %1585 = vlog2.f32 %v2059_v17  ;;  %v966_v16 = vcombine.high %v2011_v58, %v2011_v58 }
  0x5a   : > { %v2068_v34 = vmax.f32 %v881_v24, %v882_v13  ;;  %1587 = vlog2.f32 %v2062_v32  ;;  %v889_v42 = vrot.slane %v888_v41, 1  ;;  %v969_v10 = vsel %vm460_vm0, %v2007_v57, 0.0 }
  0x5b   : > { %v899_v61 = vsub.f32 %v1959_v25, %v895_v33  ;;  %v773_v9 = vrot.slane %v1932_v14, 1  ;;  %v2459_v24 = vrot.slane %v1934_v15, 2  ;;  %v976_v18 = vsel %vm460_vm0, %v965_v60, 0.0 }
  0x5c   : > { %v2083_v53 = vmax.f32 %v888_v41, %v889_v42  ;;  %v970_v29 = vrot.slane %v969_v10, 4  ;;  %v983_v11 = vsel %vm460_vm0, %v2011_v58, 0.0  ;;  %v977_v40 = vrot.slane %v976_v18, 4  ;;  %v2123_v42 = vld [vmem:[%s1738_s26 + $0x30] sm:$0xff] }
  0x5d   : > { %v793_v38 = vadd.f32 %v2459_v24, %v1934_v15  ;;  %v901_v46 = vmul.f32 1.442695, %v899_v61  ;;  %v990_v25 = vsel %vm460_vm0, %v966_v16, 0.0  ;;  %v1045_v57 = vrot.slane %v1989_v35, %v1730_v4 }
  0x5e   : > { %v1049_v45 = vrot.slane %v1989_v35, %v1733_v5  ;;  %v780_v15 = vrot.slane %v1942_v48, 1  ;;  %v787_v23 = vrot.slane %v1956_v26, 1  ;;  %v896_v39 = vcombine.low %v2068_v34, %v2083_v53 }
  0x5f   : > { %1589 = vpow2.f32 %v901_v46  ;;  %v794_v6 = vrot.slane %v793_v38, 1  ;;  %v984_v58 = vrot.slane %v983_v11, 4  ;;  %v2460_v12 = vrot.slane %v1989_v35, %v1724_v2 }
  0x60   : > { %v2463_v5 = vrot.slane %v1989_v35, %v1727_v3  ;;  %v900_v41 = vsub.f32 %v1962_v27, %v896_v39  ;;  %v2113_v33 = vadd.f32 %v970_v29, %v969_v10  ;;  %v991_v60 = vrot.slane %v990_v25, 4  ;;  %v2136_v29 = vld [vmem:[%s1738_s26 + $0x38] sm:$0xff] }
  0x61   : > { %vm2100_vm14 = vcmp.eq.s32.totalorder %v1719_v1, %v2460_v12  ;;  %vm2116_vm2 = vcmp.eq.s32.totalorder %v1719_v1, %v1045_v57  ;;  %v2120_v16 = vadd.f32 %v977_v40, %v976_v18  ;;  %vm2126_vm3 = vcmp.eq.s32.totalorder %v1719_v1, %v1049_v45 }
  0x62   : > { %vm2108_vm15 = vcmp.eq.s32.totalorder %v1719_v1, %v2463_v5  ;;  %v774_v35 = vadd.f32 %v773_v9, %v1932_v14  ;;  %v903_v27 = vmul.f32 1.442695, %v900_v41  ;;  %v781_v61 = vadd.f32 %v780_v15, %v1942_v48 }
  0x63   : > { %v788_v10 = vadd.f32 %v787_v23, %v1956_v26  ;;  %v795_v24 = vadd.f32 %v794_v6, %v793_v38  ;;  %v2133_v46 = vadd.f32 %v984_v58, %v983_v11  ;;  %v972_v40 = vrot.slane %v2113_v33, 2 }
  0x64   : > { %v1582_v18 = vpop.eup %1581  ;;  %1591 = vpow2.f32 %v903_v27  ;;  %v2139_v57 = vadd.f32 %v991_v60, %v990_v25  ;;  %v1060_v45 = vcombine.high %v2123_v42, %v2123_v42  ;;  %v2147_v26 = vsel %vm2100_vm14, 1.0, %v2450_v43 }
  0x65   : > { %v1584_v14 = vpop.eup %1583  ;;  %v797_v9 = vmul.f32 0.6931472, %v1582_v18  ;;  %v2152_v38 = vsel %vm2108_vm15, 1.0, %v2450_v43  ;;  %v2157_v15 = vsel %vm2116_vm2, 1.0, %v2450_v43  ;;  %v1061_v23 = vcombine.high %v2136_v29, %v2136_v29 }
  0x66   : > { %v1586_v11 = vpop.eup %1585  ;;  %v801_v25 = vmul.f32 0.6931472, %v1584_v14  ;;  %v1064_v39 = vsel %vm460_vm0, %v2123_v42, -inf  ;;  %v2167_v4 = vsel %vm2126_vm3, 1.0, %v2450_v43  ;;  %v1071_v60 = vsel %vm460_vm0, %v1060_v45, -inf }
  0x67   : > { %v1588_v6 = vpop.eup %1587  ;;  %v799_v58 = vmul.f32 0.6931472, %v1586_v11  ;;  %v804_v12 = vadd.f32 %v797_v9, %v1901_v47  ;;  %v1065_v5 = vrot.slane %v1064_v39, 4  ;;  %v1078_v2 = vsel %vm460_vm0, %v2136_v29, -inf }
  0x68   : > { %v803_v13 = vmul.f32 0.6931472, %v1588_v6  ;;  %v806_v41 = vadd.f32 %v801_v25, %v1903_v52  ;;  %v1072_v11 = vrot.slane %v1071_v60, 4  ;;  %v1079_v3 = vrot.slane %v1078_v2, 4 }
  0x69   : > { %v805_v27 = vadd.f32 %v799_v58, %v1907_v59  ;;  %v810_v18 = vsub.f32 %v804_v12, %v774_v35  ;;  %v1066_v14 = vmax.f32 %v1064_v39, %v1065_v5  ;;  %v1085_v43 = vsel %vm460_vm0, %v1061_v23, -inf }
  0x6a   : > { %v807_v47 = vadd.f32 %v803_v13, %v1916_v62  ;;  %v812_v9 = vsub.f32 %v806_v41, %v788_v10  ;;  %v1073_v25 = vmax.f32 %v1071_v60, %v1072_v11  ;;  %v2205_v54 = vcombine.low %v2147_v26, %v2152_v38 }
  0x6b   : > { %v811_v6 = vsub.f32 %v805_v27, %v781_v61  ;;  %v2181_v52 = vadd.f32 %v810_v18, %v609_v22  ;;  %v1067_v45 = vrot.slane %v1066_v14, 2 }
  0x6c   : > { %v2176_v48 = vpop.eup %1589  ;;  %v813_v59 = vsub.f32 %v807_v47, %v795_v24  ;;  %v2186_v35 = vadd.f32 %v812_v9, %v611_v0  ;;  %v1074_v61 = vrot.slane %v1073_v25, 2  ;;  %v1080_v0 = vmax.f32 %v1078_v2, %v1079_v3 }
  0x6d   : > { %v907_v62 = vcombine.high %v2176_v48, %v2176_v48  ;;  %v911_v10 = vsel %vm460_vm0, %v2176_v48, 0.0  ;;  %v2195_v49 = vadd.f32 %v811_v6, %v610_v21  ;;  %v1068_v22 = vmax.f32 %v1066_v14, %v1067_v45 }
  0x6e   : > { %v912_v30 = vrot.slane %v911_v10, 4  ;;  %v2200_v51 = vadd.f32 %v813_v59, %v612_v44  ;;  %v1086_v24 = vrot.slane %v1085_v43, 4  ;;  %v1075_v12 = vmax.f32 %v1073_v25, %v1074_v61 }
  0x6f   : > { %v918_v63 = vsel %vm460_vm0, %v907_v62, 0.0  ;;  %v1069_v58 = vrot.slane %v1068_v22, 1  ;;  %v1081_v5 = vrot.slane %v1080_v0, 2  ;;  %v2209_v21 = vcombine.low %v2157_v15, %v2167_v4 }
  0x70   : > { %v913_v23 = vadd.f32 %v912_v30, %v911_v10  ;;  %v919_v39 = vrot.slane %v918_v63, 4  ;;  %v1087_v50 = vmax.f32 %v1085_v43, %v1086_v24  ;;  %v1076_v41 = vrot.slane %v1075_v12, 1 }
  0x71   : > { %v2211_v31 = vpop.eup %1591  ;;  %v2213_v13 = vmax.f32 %v1068_v22, %v1069_v58  ;;  %v1082_v27 = vmax.f32 %v1080_v0, %v1081_v5  ;;  %v1162_v45 = vmul.f32 %v2123_v42, %v2205_v54  ;;  %v986_v58 = vrot.slane %v2133_v46, 2 }
  0x72   : > { %v914_v37 = vrot.slane %v913_v23, 2  ;;  %v920_v44 = vadd.f32 %v919_v39, %v918_v63  ;;  %v908_v60 = vcombine.high %v2211_v31, %v2211_v31  ;;  %v925_v2 = vsel %vm460_vm0, %v2211_v31, 0.0 }
  0x73   : > { %v1088_v18 = vrot.slane %v1087_v50, 2  ;;  %v926_v47 = vrot.slane %v925_v2, 4  ;;  %v2219_v9 = vmax.f32 %v1075_v12, %v1076_v41  ;;  %v1083_v43 = vrot.slane %v1082_v27, 1 }
  0x74   : > { %v915_v14 = vadd.f32 %v914_v37, %v913_v23  ;;  %v921_v11 = vrot.slane %v920_v44, 2  ;;  %v932_v3 = vsel %vm460_vm0, %v908_v60, 0.0  ;;  %v1163_v63 = vmul.f32 %v2136_v29, %v2209_v21 }
  0x75   : > { %v1089_v6 = vmax.f32 %v1087_v50, %v1088_v18  ;;  %v927_v62 = vadd.f32 %v926_v47, %v925_v2  ;;  %v933_v10 = vrot.slane %v932_v3, 4  ;;  %v2224_v30 = vmax.f32 %v1082_v27, %v1083_v43 }
  0x76   : > { %v916_v25 = vrot.slane %v915_v14, 1  ;;  %v922_v59 = vadd.f32 %v921_v11, %v920_v44  ;;  %v1096_v61 = vcombine.low %v2213_v13, %v2219_v9  ;;  %v993_v12 = vrot.slane %v2139_v57, 2 }
  0x77   : > { %v1090_v22 = vrot.slane %v1089_v6, 1  ;;  %v928_v23 = vrot.slane %v927_v62, 2  ;;  %v934_v39 = vadd.f32 %v933_v10, %v932_v3  ;;  %v973_v60 = vadd.f32 %v972_v40, %v2113_v33 }
  0x78   : > { %v917_v0 = vadd.f32 %v916_v25, %v915_v14  ;;  %v923_v24 = vrot.slane %v922_v59, 1  ;;  %v1100_v50 = vsub.f32 %v2123_v42, %v1096_v61  ;;  %v2470_v2 = vrot.slane %v2120_v16, 2 }
  0x79   : > { %v2232_v5 = vmax.f32 %v1089_v6, %v1090_v22  ;;  %v929_v44 = vadd.f32 %v928_v23, %v927_v62  ;;  %v935_v41 = vrot.slane %v934_v39, 2  ;;  %v1166_v42 = vcombine.high %v1162_v45, %v1162_v45 }
  0x7a   : > { %v924_v37 = vadd.f32 %v923_v24, %v922_v59  ;;  %1593 = vlog2.f32 %v917_v0  ;;  %v980_v27 = vadd.f32 %v2470_v2, %v2120_v16  ;;  %v1102_v14 = vmul.f32 1.442695, %v1100_v50 }
  0x7b   : > { %v1097_v18 = vcombine.low %v2224_v30, %v2232_v5  ;;  %v930_v11 = vrot.slane %v929_v44, 1  ;;  %v936_v47 = vadd.f32 %v935_v41, %v934_v39  ;;  %v987_v3 = vadd.f32 %v986_v58, %v2133_v46  ;;  %v2471_v58 = vld [vmem:[#allocation3_spill] sm:$0xff] }
  0x7c   : > { %1595 = vlog2.f32 %v924_v37  ;;  %v1170_v6 = vsel %vm460_vm0, %v1162_v45, 0.0  ;;  %v994_v25 = vadd.f32 %v993_v12, %v2139_v57  ;;  %v1177_v10 = vsel %vm460_vm0, %v1166_v42, 0.0  ;;  %v2472_v12 = vld [vmem:[#allocation8_spill] sm:$0xff] }
  0x7d   : > { %v1101_v43 = vsub.f32 %v2136_v29, %v1097_v18  ;;  %1597 = vpow2.f32 %v1102_v14  ;;  %v931_v33 = vadd.f32 %v930_v11, %v929_v44  ;;  %v937_v40 = vrot.slane %v936_v47, 1 }
  0x7e   : > { %v1171_v62 = vrot.slane %v1170_v6, 4  ;;  %v974_v22 = vrot.slane %v973_v60, 1  ;;  %v981_v61 = vrot.slane %v980_v27, 1  ;;  %v988_v24 = vrot.slane %v987_v3, 1 }
  0x7f   : > { %v1104_v16 = vmul.f32 1.442695, %v1101_v43  ;;  %v2247_v59 = vadd.f32 %v937_v40, %v936_v47  ;;  %1599 = vlog2.f32 %v931_v33  ;;  %v995_v46 = vrot.slane %v994_v25, 1  ;;  %v2477_v40 = vld [vmem:[#allocation9_spill] sm:$0xff] }
  0x80   : > { %v1184_v29 = vsel %vm460_vm0, %v1163_v63, 0.0  ;;  %v820_v45 = vadd.f32 %v1852_v36, %v1784_v20  ;;  %v1167_v57 = vcombine.high %v1163_v63, %v1163_v63  ;;  %v1178_v23 = vrot.slane %v1177_v10, 4  ;;  %v2473_v20 = vld [vmem:[#allocation17_spill] sm:$0xff] }
  0x81   : > { %1601 = vpow2.f32 %v1104_v16  ;;  %v2255_v39 = vadd.f32 %v1171_v62, %v1170_v6  ;;  %v821_v50 = vadd.f32 %v2472_v12, %v2471_v58  ;;  %v975_v44 = vadd.f32 %v974_v22, %v973_v60  ;;  %v2474_v60 = vld [vmem:[#allocation18_spill] sm:$0xff]  ;;  %v2476_v6 = vld [vmem:[#allocation4_spill] sm:$0xff]  ;;  %v2481_v58 = vld [vmem:[#allocation19_spill] sm:$0xff] }
  0x82   : > { %1603 = vlog2.f32 %v2247_v59  ;;  %v982_v41 = vadd.f32 %v981_v61, %v980_v27  ;;  %v1185_v2 = vrot.slane %v1184_v29, 4  ;;  %v2261_v18 = vadd.f32 %v988_v24, %v987_v3  ;;  %v2480_v22 = vld [vmem:[#allocation10_spill] sm:$0xff] }
  0x83   : > { %1605 = vrcp.f32 %v1940_v7  ;;  %v2263_v14 = vadd.f32 %v995_v46, %v994_v25  ;;  %v1021_v36 = vadd.f32 %v2473_v20, %v820_v45  ;;  %v2267_v63 = vadd.f32 %v1178_v23, %v1177_v10  ;;  %v2478_v10 = vld [vmem:[#allocation16_spill] sm:$0xff] }
  0x84   : > { %1607 = vrcp.f32 %v1953_v19  ;;  %v2270_v19 = vsel %vm460_vm0, %v1167_v57, 0.0  ;;  %v1022_v27 = vadd.f32 %v2474_v60, %v821_v50  ;;  %v2275_v3 = vadd.f32 %v1185_v2, %v1184_v29 }
  0x85   : > { %1609 = vrcp.f32 %v2049_v56  ;;  %v1173_v56 = vrot.slane %v2255_v39, 2  ;;  %v1222_v47 = vadd.f32 %v2147_v26, %v1021_v36  ;;  %v822_v25 = vadd.f32 %v2477_v40, %v2476_v6 }
  0x86   : > { %1611 = vrcp.f32 %v2059_v17  ;;  %v2475_v17 = vld [vmem:[#allocation15_spill] sm:$0xff]  ;;  %v1223_v43 = vadd.f32 %v2152_v38, %v1022_v27  ;;  %v1192_v38 = vrot.slane %v2270_v19, 4 }
  0x87   : > { %v1594_v7 = vpop.eup %1593  ;;  %1613 = vrcp.f32 %v917_v0  ;;  %v2297_v12 = vadd.f32 %v2481_v58, %v822_v25 }
  0x88   : > { %v998_v11 = vmul.f32 0.6931472, %v1594_v7  ;;  %1615 = vrcp.f32 %v924_v37  ;;  %v2479_v37 = vld [vmem:[#allocation5_spill] sm:$0xff]  ;;  %v1248_v23 = vcombine.low %v1222_v47, %v1223_v43 }
  0x89   : > { %v1596_v42 = vpop.eup %1595  ;;  %1617 = vrcp.f32 %v2475_v17  ;;  %v823_v26 = vadd.f32 %v2480_v22, %v2479_v37 }
  0x8a   : > { %v2281_v16 = vpop.eup %1597  ;;  %v1000_v0 = vmul.f32 0.6931472, %v1596_v42  ;;  %v1005_v62 = vadd.f32 %v998_v11, %v2031_v55  ;;  %1619 = vrcp.f32 %v2478_v10  ;;  %1254 = vst [vmem:[%s2313_s11] sm:$0xff] %v1248_v23 }
  0x8b   : > { %v1108_v61 = vcombine.high %v2281_v16, %v2281_v16  ;;  %v1112_v24 = vsel %vm460_vm0, %v2281_v16, 0.0  ;;  %1621 = vrcp.f32 %v2053_v8 }
  0x8c   : > { %v1006_v46 = vadd.f32 %v1000_v0, %v2055_v28  ;;  %v1011_v29 = vsub.f32 %v1005_v62, %v975_v44  ;;  %v1113_v45 = vrot.slane %v1112_v24, 4  ;;  %1623 = vrcp.f32 %v2062_v32  ;;  %v1600_v55 = vpop.eup %1599 }
  0x8d   : > { %v1119_v57 = vsel %vm460_vm0, %v1108_v61, 0.0  ;;  %1625 = vrcp.f32 %v931_v33  ;;  %v1002_v2 = vmul.f32 0.6931472, %v1600_v55  ;;  %v2483_v55 = vld [vmem:[#allocation13_spill] sm:$0xff] }
  0x8e   : > { %v2299_v50 = vpop.eup %1601  ;;  %v1012_v20 = vsub.f32 %v1006_v46, %v982_v41  ;;  %v2302_v8 = vadd.f32 %v1011_v29, %v2181_v52  ;;  %v1114_v28 = vadd.f32 %v1113_v45, %v1112_v24  ;;  %v1120_v36 = vrot.slane %v1119_v57, 4 }
  0x8f   : > { %v1604_v44 = vpop.eup %1603  ;;  %v1109_v32 = vcombine.high %v2299_v50, %v2299_v50  ;;  %v1126_v33 = vsel %vm460_vm0, %v2299_v50, 0.0  ;;  %1627 = vrcp.f32 %v2247_v59  ;;  %v1007_v52 = vadd.f32 %v1002_v2, %v2068_v34 }
  0x90   : > { %v1606_v7 = vpop.eup %1605  ;;  %v1004_v41 = vmul.f32 0.6931472, %v1604_v44  ;;  %v2317_v60 = vadd.f32 %v1012_v20, %v2195_v49  ;;  %v1115_v27 = vrot.slane %v1114_v28, 2  ;;  %v1121_v47 = vadd.f32 %v1120_v36, %v1119_v57  ;;  %v2482_v49 = vld [vmem:[#allocation20_spill] sm:$0xff] }
  0x91   : > { %v1608_v11 = vpop.eup %1607  ;;  %v1127_v42 = vrot.slane %v1126_v33, 4  ;;  %v1133_v17 = vsel %vm460_vm0, %v1109_v32, 0.0  ;;  %v1013_v6 = vsub.f32 %v1007_v52, %v2261_v18  ;;  %v1024_v37 = vadd.f32 %v2482_v49, %v823_v26 }
  0x92   : > { %v1610_v59 = vpop.eup %1609  ;;  %v1008_v43 = vadd.f32 %v1004_v41, %v2083_v53  ;;  %v1116_v40 = vadd.f32 %v1115_v27, %v1114_v28  ;;  %v1134_v25 = vrot.slane %v1133_v17, 4  ;;  %v1122_v62 = vrot.slane %v1121_v47, 2 }
  0x93   : > { %v1612_v0 = vpop.eup %1611  ;;  %v1128_v34 = vadd.f32 %v1127_v42, %v1126_v33  ;;  %v545_v10 = vcombine.low %v1606_v7, %v1608_v11  ;;  %v2326_v24 = vadd.f32 %v1013_v6, %v2186_v35  ;;  %v2484_v35 = vld [vmem:[#allocation6_spill] sm:$0xff]  ;;  %v2485_v33 = vld [vmem:[#allocation23_spill] sm:$0xff]  ;;  %v1193_v49 = vadd.f32 %v1192_v38, %v2270_v19  ;;  %v2491_v19 = vld [vmem:[#allocation12_spill] sm:$0xff] }
  0x94   : > { %v1614_v22 = vpop.eup %1613  ;;  %v1014_v61 = vsub.f32 %v1008_v43, %v2263_v14  ;;  %v1117_v46 = vrot.slane %v1116_v40, 1  ;;  %v1135_v29 = vadd.f32 %v1134_v25, %v1133_v17  ;;  %v1123_v45 = vadd.f32 %v1122_v62, %v1121_v47  ;;  %v2486_v17 = vld [vmem:[#allocation11_spill] sm:$0xff] }
  0x95   : > { %v1616_v53 = vpop.eup %1615  ;;  %v1129_v18 = vrot.slane %v1128_v34, 2  ;;  %v549_v57 = vmul.f32 %v2483_v55, %v545_v10  ;;  %v746_v58 = vcombine.low %v1610_v59, %v1612_v0  ;;  %v2488_v0 = vld [vmem:[#allocation14_spill] sm:$0xff] }
  0x96   : > { %v1618_v2 = vpop.eup %1617  ;;  %v2330_v20 = vadd.f32 %v1014_v61, %v2200_v51  ;;  %v1118_v23 = vadd.f32 %v1117_v46, %v1116_v40  ;;  %v1136_v26 = vrot.slane %v1135_v29, 2  ;;  %v947_v28 = vcombine.low %v1614_v22, %v1616_v53  ;;  %v2487_v40 = vld [vmem:[#allocation21_spill] sm:$0xff]  ;;  %v2489_v46 = vld [vmem:[#allocation7_spill] sm:$0xff]  ;;  %v2490_v53 = vld [vmem:[#allocation24_spill] sm:$0xff] }
  0x97   : > { %v1620_v44 = vpop.eup %1619  ;;  %v1124_v14 = vrot.slane %v1123_v45, 1  ;;  %v1130_v32 = vadd.f32 %v1129_v18, %v1128_v34  ;;  %v613_v36 = vmul.f32 %v2484_v35, %v549_v57  ;;  %v750_v7 = vmul.f32 %v2485_v33, %v746_v58 }
  0x98   : > { %v1622_v41 = vpop.eup %1621  ;;  %v1137_v52 = vadd.f32 %v1136_v26, %v1135_v29  ;;  %1629 = vlog2.f32 %v1118_v23  ;;  %v951_v27 = vmul.f32 %v2176_v48, %v947_v28  ;;  %v546_v11 = vcombine.low %v1618_v2, %v1620_v44 }
  0x99   : > { %v1624_v47 = vpop.eup %1623  ;;  %v1125_v42 = vadd.f32 %v1124_v14, %v1123_v45  ;;  %v1131_v51 = vrot.slane %v1130_v32, 1  ;;  %v814_v59 = vmul.f32 %v2486_v17, %v750_v7  ;;  %1631 = vrcp.f32 %v1118_v23 }
  0x9a   : > { %v1626_v43 = vpop.eup %1625  ;;  %v1138_v6 = vrot.slane %v1137_v52, 1  ;;  %v1015_v25 = vmul.f32 %v2487_v40, %v951_v27  ;;  %v550_v62 = vmul.f32 %v2488_v0, %v546_v11  ;;  %v747_v34 = vcombine.low %v1622_v41, %v1624_v47 }
  0x9b   : > { %v1132_v10 = vadd.f32 %v1131_v51, %v1130_v32  ;;  %1633 = vlog2.f32 %v1125_v42  ;;  %v816_v48 = vadd.f32 %v814_v59, %v613_v36  ;;  %v1180_v18 = vrot.slane %v2267_v63, 2  ;;  %v2492_v36 = vld [vmem:[#allocation22_spill] sm:$0xff] }
  0x9c   : > { %v1628_v22 = vpop.eup %1627  ;;  %v1139_v61 = vadd.f32 %v1138_v6, %v1137_v52  ;;  %1635 = vrcp.f32 %v1125_v42  ;;  %v614_v29 = vmul.f32 %v2489_v46, %v550_v62  ;;  %v751_v45 = vmul.f32 %v2490_v53, %v747_v34 }
  0x9d   : > { %1637 = vlog2.f32 %v1132_v10  ;;  %v2344_v55 = vadd.f32 %v1015_v25, %v816_v48  ;;  %v948_v58 = vcombine.low %v1626_v43, %v1628_v22  ;;  %v1174_v2 = vadd.f32 %v1173_v56, %v2255_v39 }
  0x9e   : > { %1639 = vlog2.f32 %v1139_v61  ;;  %v815_v38 = vmul.f32 %v2491_v19, %v751_v45  ;;  %v1187_v23 = vrot.slane %v2275_v3, 2  ;;  %v1194_v26 = vrot.slane %v1193_v49, 2 }
  0x9f   : > { %v952_v28 = vmul.f32 %v2211_v31, %v948_v58  ;;  %1641 = vrcp.f32 %v1132_v10  ;;  %v1224_v14 = vadd.f32 %v2157_v15, %v2297_v12  ;;  %v1225_v32 = vadd.f32 %v2167_v4, %v1024_v37 }
  0xa0   : > { %v817_v44 = vadd.f32 %v815_v38, %v614_v29  ;;  %1643 = vrcp.f32 %v1139_v61  ;;  %v1181_v35 = vadd.f32 %v1180_v18, %v2267_v63  ;;  %v1175_v56 = vrot.slane %v1174_v2, 1 }
  0xa1   : > { %v1016_v39 = vmul.f32 %v2492_v36, %v952_v28  ;;  %v1249_v33 = vcombine.low %v1224_v14, %v1225_v32  ;;  %v1188_v41 = vadd.f32 %v1187_v23, %v2275_v3  ;;  %v1195_v52 = vadd.f32 %v1194_v26, %v1193_v49 }
  0xa2   : > { %v607_v31 = vmul.f32 %v549_v57, %v549_v57  ;;  %v808_v47 = vmul.f32 %v750_v7, %v750_v7  ;;  %v1182_v51 = vrot.slane %v1181_v35, 1  ;;  %v1176_v15 = vadd.f32 %v1175_v56, %v1174_v2 }
  0xa3   : > { %v2358_v11 = vadd.f32 %v1016_v39, %v817_v44  ;;  %v1670_v4 = vmov 1966171168   ;;  %1255 = vst [vmem:[%s2313_s11 + $0x8] sm:$0xff] %v1249_v33  ;;  %v1189_v63 = vrot.slane %v1188_v41, 1  ;;  %v1196_v59 = vrot.slane %v1195_v52, 1 }
  0xa4   : > { %v1264_v37 = vunpack.c.l.s4 %v1670_v4  ;;  %v818_v40 = vadd.f32 %v808_v47, %v607_v31  ;;  %v1009_v3 = vmul.f32 %v951_v27, %v951_v27  ;;  %v1183_v0 = vadd.f32 %v1182_v51, %v1181_v35 }
  0xa5   : > { %v1630_v42 = vpop.eup %1629  ;;  %v608_v57 = vmul.f32 %v550_v62, %v550_v62  ;;  %v809_v7 = vmul.f32 %v751_v45, %v751_v45  ;;  %v1190_v46 = vadd.f32 %v1189_v63, %v1188_v41  ;;  %v1197_v29 = vadd.f32 %v1196_v59, %v1195_v52 }
  0xa6   : > { %v1632_v17 = vpop.eup %1631  ;;  %v1199_v12 = vmul.f32 0.6931472, %v1630_v42  ;;  %v1265_v48 = vunpack.c.0.s8 %v1264_v37  ;;  %v1019_v19 = vadd.f32 %v1009_v3, %v818_v40  ;;  %v1010_v26 = vmul.f32 %v952_v28, %v952_v28  ;;  %v1256_v42 = vld [vmem:[%s1764_s8] sm:$0xf] }
  0xa7   : > { %v819_v23 = vadd.f32 %v809_v7, %v608_v57 }
  0xa8   : > { %v1634_v43 = vpop.eup %1633  ;;  %v1206_v6 = vadd.f32 %v1199_v12, %v2213_v13 }
  0xa9   : > { %v1636_v25 = vpop.eup %1635  ;;  %v1201_v34 = vmul.f32 0.6931472, %v1634_v43 }
  0xaa   : > { %v1638_v10 = vpop.eup %1637  ;;  %v1212_v49 = vsub.f32 %v1206_v6, %v1176_v15  ;;  %v1148_v22 = vcombine.low %v1632_v17, %v1636_v25 }
  0xab   : > { %v1640_v61 = vpop.eup %1639  ;;  %v1203_v53 = vmul.f32 0.6931472, %v1638_v10  ;;  %v1207_v18 = vadd.f32 %v1201_v34, %v2219_v9 }
  0xac   : > { %v1642_v58 = vpop.eup %1641  ;;  %v1205_v2 = vmul.f32 0.6931472, %v1640_v61  ;;  %v1226_v13 = vadd.f32 %v1212_v49, %v2302_v8  ;;  %v1152_v27 = vmul.f32 %v2281_v16, %v1148_v22  ;;  %v1268_v16 = vsub.s32 %v1265_v48, %v1719_v1 }
  0xad   : > { %v1644_v38 = vpop.eup %1643  ;;  %v1208_v62 = vadd.f32 %v1203_v53, %v2224_v30  ;;  %v1213_v45 = vsub.f32 %v1207_v18, %v1183_v0 }
  0xae   : > { %v1209_v44 = vadd.f32 %v1205_v2, %v2232_v5  ;;  %v1216_v14 = vmul.f32 %v2205_v54, %v1152_v27  ;;  %v1149_v9 = vcombine.low %v1642_v58, %v1644_v38  ;;  %v1210_v32 = vmul.f32 %v1152_v27, %v1152_v27 }
  0xaf   : > { %v1214_v35 = vsub.f32 %v1208_v62, %v1190_v46  ;;  %v1227_v8 = vadd.f32 %v1213_v45, %v2317_v60  ;;  %v1020_v60 = vadd.f32 %v1010_v26, %v819_v23 }
  0xb0   : > { %v1215_v36 = vsub.f32 %v1209_v44, %v1197_v29  ;;  %v1218_v39 = vadd.f32 %v1216_v14, %v2344_v55  ;;  %v1153_v30 = vmul.f32 %v2299_v50, %v1149_v9  ;;  %v1220_v56 = vadd.f32 %v1210_v32, %v1019_v19 }
  0xb1   : > { %v1228_v54 = vadd.f32 %v1214_v35, %v2326_v24  ;;  %v1261_v5 = vcombine.low %v1226_v13, %v1227_v8 }
  0xb2   : > { %v1229_v1 = vadd.f32 %v1215_v36, %v2330_v20  ;;  %v1217_v55 = vmul.f32 %v2209_v21, %v1153_v30  ;;  %v1211_v28 = vmul.f32 %v1153_v30, %v1153_v30  ;;  %1234 = vst [vmem:[%s381_s14] sm:$0xff] %v1218_v39  ;;  %1240 = vst [vmem:[%s390_s17] sm:$0xff] %v1220_v56 }
  0xb3   : > { %v1269_v50 = vrot.slane %v1261_v5, %v1268_v16 }
  0xb4   : > { %v1262_v33 = vcombine.low %v1228_v54, %v1229_v1  ;;  %v1219_v41 = vadd.f32 %v1217_v55, %v2358_v11  ;;  %v1221_v52 = vadd.f32 %v1211_v28, %v1020_v60 }
  0xb6   : > { %v1276_v31 = vrot.slane %v1262_v33, %v1268_v16  ;;  %1235 = vst [vmem:[%s381_s14 + $0x8] sm:$0xff] %v1219_v41  ;;  %1241 = vst [vmem:[%s390_s17 + $0x8] sm:$0xff] %v1221_v52 }
  0xb8   : > { %v1277_v47 = vcombine.low %v1269_v50, %v1276_v31 }
  0xba   : > { %v1284_v24 = vrot.slane %v1277_v47, %v1268_v16 }
  0xbc   : > { %v1286_v51 = vadd.f32 %v1284_v24, %v1256_v42 }
  0xbe   : > { %1291 = vst.msk [vmem:[%s1764_s8] sm:$0xf] %vm1747_vm1, %v1286_v51 }
  0xbf PF: > { %s16_s20 = sadd.s32 1, %s1667_s20   ;;  %s2494_s18 = smov %s1663_s19 }
  0xc0   : > { %p13_p5 = scmp.ge.s32.totalorder %s16_s20, 4   ;;  %s2495_s19 = smov %s2497_s21 }
  0xc2   :  { %15 = sbr.rel (!%p13_p5) target bundleno = 2 (0x2), region = 107 }

</bundles_post_ra>
